<compile_context>
chip_gen: v7x
topology: tpu7x:2x2x1
jax: 0.10.0
libtpu: 0.0.40
codegen_flags: <defaults>
</compile_context>

<pallas_src>
import math
from functools import partial

import numpy as np
import jax
import jax.numpy as jnp
from jax import lax
from jax.experimental import pallas as pl
from jax.experimental.pallas import tpu as pltpu


# ----------------------------- in-kernel helpers -----------------------------

def _layernorm_f32(x, gamma, beta, eps=1e-5):
    # x: (N, W) fp32; gamma/beta (1, W).  Biased variance == nn.LayerNorm.
    mean = jnp.mean(x, axis=-1, keepdims=True)
    xc = x - mean
    var = jnp.mean(xc * xc, axis=-1, keepdims=True)
    return xc * lax.rsqrt(var + eps) * gamma + beta


def _gelu_tanh(x):
    # tanh-approximate GELU: EUP-friendly. Small (<~3e-3) deviation from exact
    # erf GELU (nn.GELU default) — documented, within test tolerance.
    c = math.sqrt(2.0 / math.pi)
    return 0.5 * x * (1.0 + jnp.tanh(c * (x + 0.044715 * x * x * x)))


# --------------------------------- kernel ------------------------------------

def fused_transformer_kernel(
    x_ref,                       # (B*T, W)   input activations (read at layer 0)
    ln1_g_ref, ln1_b_ref,        # (1, 1, W)  fp32
    wqkv_ref, bqkv_ref,          # (1, W, 3W) bf16 / (1, 1, 3W) fp32
    wproj_ref, bproj_ref,        # (1, W, W)  bf16 / (1, 1, W)  fp32
    ln2_g_ref, ln2_b_ref,        # (1, 1, W)  fp32
    wfc_ref, bfc_ref,            # (1, W, 4W) bf16 / (1, 1, 4W) fp32
    wcp_ref, bcp_ref,            # (1, 4W, W) bf16 / (1, 1, W)  fp32
    out_ref,                     # (B*T, W)   output (written at last layer)
    act_ref,                     # scratch (B*T, W) fp32 -- residual stream
    tmp_ref,                     # scratch (B*T, W) fp32 -- head-output slab / ln2 slab
    *, heads: int, batch: int, mlp_chunk: int,
):
    layer = pl.program_id(0)
    n_layers = pl.num_programs(0)

    @pl.when(layer == 0)
    def _():
        act_ref[...] = x_ref[...].astype(jnp.float32)

    x = act_ref[...]                      # (BT, W) fp32 residual stream
    BT, W = x.shape
    seq = BT // batch
    C = W // heads
    cdt = wqkv_ref.dtype                  # MXU compute dtype (bf16)

    # ------------------------------ attention -------------------------------
    h1 = _layernorm_f32(x, ln1_g_ref[0], ln1_b_ref[0])
    qkv = jnp.dot(h1.astype(cdt), wqkv_ref[0],
                  preferred_element_type=jnp.float32) + bqkv_ref[0]
    # columns are pre-permuted to [Q | K | V] (heads contiguous inside each);
    # 1/sqrt(sqrt(C)) is already folded into the Q, K weights & biases.

    for b in range(batch):                # small, static
        r0 = b * seq
        qb = qkv[r0:r0 + seq, 0 * W:1 * W]
        vb = qkv[r0:r0 + seq, 2 * W:3 * W]
        # one transpose per batch element, amortised over all heads
        kbT = qkv[r0:r0 + seq, 1 * W:2 * W].T.astype(cdt)       # (W, seq)
        for hd in range(heads):           # static unroll; static lane slices
            lo = hd * C
            s = jnp.dot(qb[:, lo:lo + C].astype(cdt), kbT[lo:lo + C, :],
                        preferred_element_type=jnp.float32)     # (seq, seq)
            s = s - jnp.max(s, axis=-1, keepdims=True)
            p = jnp.exp(s)
            denom = jnp.sum(p, axis=-1, keepdims=True)
            o = jnp.dot(p.astype(cdt), vb[:, lo:lo + C].astype(cdt),
                        preferred_element_type=jnp.float32)     # (seq, C)
            # normalise the (seq, C) output, not the (seq, seq) probabilities
            tmp_ref[r0:r0 + seq, lo:lo + C] = o * pl.reciprocal(denom, approx=True)

    attn = jnp.dot(tmp_ref[...].astype(cdt), wproj_ref[0],
                   preferred_element_type=jnp.float32) + bproj_ref[0]
    x = x + attn

    # --------------------------------- MLP -----------------------------------
    h2 = _layernorm_f32(x, ln2_g_ref[0], ln2_b_ref[0])
    n_chunks = BT // mlp_chunk

    if n_chunks == 1:
        mid = jnp.dot(h2.astype(cdt), wfc_ref[0],
                      preferred_element_type=jnp.float32) + bfc_ref[0]
        mid = _gelu_tanh(mid)
        x = x + jnp.dot(mid.astype(cdt), wcp_ref[0],
                        preferred_element_type=jnp.float32) + bcp_ref[0]
        act_ref[...] = x
    else:
        act_ref[...] = x                  # post-attention residual
        tmp_ref[...] = h2                 # ln2 output (reuses head-output slab)
        w_fc = wfc_ref[0]
        w_cp = wcp_ref[0]
        b_fc = bfc_ref[0]                 # hoisted out of the loop
        b_cp = bcp_ref[0]

        def mlp_body(i, carry):
            r = pl.multiple_of(i * mlp_chunk, mlp_chunk)
            hc = tmp_ref[pl.ds(r, mlp_chunk), :].astype(cdt)
            mid = jnp.dot(hc, w_fc, preferred_element_type=jnp.float32) + b_fc
            mid = _gelu_tanh(mid)
            oc = jnp.dot(mid.astype(cdt), w_cp,
                         preferred_element_type=jnp.float32) + b_cp
            act_ref[pl.ds(r, mlp_chunk), :] += oc
            return carry

        lax.fori_loop(0, n_chunks, mlp_body, 0)

    @pl.when(layer == n_layers - 1)
    def _():
        out_ref[...] = act_ref[...].astype(out_ref.dtype)


# --------------------------------- wrapper ------------------------------------

_PARAM_ORDER = ["ln1_g", "ln1_b", "wqkv", "bqkv", "wproj", "bproj",
                "ln2_g", "ln2_b", "wfc", "bfc", "wcp", "bcp"]


def _pick_mlp_chunk(total_rows, width):
    """Largest divisor of total_rows (pref. multiple of 8) keeping the fp32
    MLP hidden chunk around <=2 MiB."""
    target = max(8, (2 * 1024 * 1024) // (16 * width))
    if total_rows <= target:
        return total_rows
    best = None
    for d in range(min(target, total_rows), 0, -1):
        if total_rows % d == 0:
            if d % 8 == 0:
                return d
            if best is None:
                best = d
    return best or total_rows


def transformer_forward(x, stacked, heads):
    """x: (B, T, W). stacked: dict of per-layer-stacked, kernel-layout params."""
    B, T, W = x.shape
    assert W % heads == 0
    L = stacked["wqkv"].shape[0]
    BT = B * T
    x_flat = x.reshape(BT, W)

    mlp_chunk = _pick_mlp_chunk(BT, W)

    def layer_spec(arr):
        # stacked weights are all 3-D: (L, d0, d1); take one layer per grid step.
        return pl.BlockSpec((1,) + arr.shape[1:], lambda l: (l, 0, 0))

    in_specs = [pl.BlockSpec((BT, W), lambda l: (0, 0))]
    args = [x_flat]
    for name in _PARAM_ORDER:
        arr = stacked[name]
        in_specs.append(layer_spec(arr))
        args.append(arr)

    # VMEM estimate: double-buffered per-layer weights + in/out blocks + two
    # (BT, W) fp32 scratches + live intermediates (qkv slab, ln slab, one MLP
    # hidden chunk, a few (T, T) scores).
    wbytes = sum(int(math.prod(stacked[n].shape[1:])) * stacked[n].dtype.itemsize
                 for n in _PARAM_ORDER)
    act_bytes = BT * W * 4
    inter_bytes = (4 * BT * W + mlp_chunk * 4 * W + 3 * T * T) * 4
    est = 2 * wbytes + 6 * act_bytes + inter_bytes

    # Generation-aware cap (v7x has 64 MiB physical VMEM per core).
    try:
        info = pltpu.get_tpu_info()
        phys = int(getattr(info, "vmem_capacity_bytes", 64 * 1024 * 1024))
    except Exception:
        phys = 64 * 1024 * 1024
    if phys < 16 * 1024 * 1024:
        phys = 64 * 1024 * 1024
    vmem_limit = int(min(max(32 * 1024 * 1024, 1.5 * est), int(0.75 * phys)))

    out = pl.pallas_call(
        partial(fused_transformer_kernel, heads=heads, batch=B,
                mlp_chunk=mlp_chunk),
        out_shape=jax.ShapeDtypeStruct((BT, W), x.dtype),
        grid_spec=pltpu.PrefetchScalarGridSpec(
            num_scalar_prefetch=0,
            grid=(L,),                            # layer axis = carry axis
            in_specs=in_specs,
            out_specs=pl.BlockSpec((BT, W), lambda l: (0, 0)),
            scratch_shapes=[pltpu.VMEM((BT, W), jnp.float32),   # residual stream
                            pltpu.VMEM((BT, W), jnp.float32)],  # head/ln2 slab
        ),
        compiler_params=pltpu.CompilerParams(
            dimension_semantics=("arbitrary",),
            vmem_limit_bytes=vmem_limit,
        ),
    )(*args)
    return out.reshape(B, T, W)


# ----------------------- parameter init / preparation -------------------------

def init_torch_params(key, *, width, layers, init_scale=0.25, dtype=jnp.float32):
    """Parameters in PyTorch layout: Linear weight (out, in), bias (out,)."""
    std = init_scale * math.sqrt(1.0 / width)     # matches Transformer.__init__
    params = []
    for _ in range(layers):
        key, k1, k2, k3, k4 = jax.random.split(key, 5)
        params.append({
            "ln1_g": jnp.ones((width,), dtype),
            "ln1_b": jnp.zeros((width,), dtype),
            "wqkv": jax.random.normal(k1, (3 * width, width), dtype) * std,
            "bqkv": jnp.zeros((3 * width,), dtype),
            "wproj": jax.random.normal(k2, (width, width), dtype) * std,
            "bproj": jnp.zeros((width,), dtype),
            "ln2_g": jnp.ones((width,), dtype),
            "ln2_b": jnp.zeros((width,), dtype),
            "wfc": jax.random.normal(k3, (4 * width, width), dtype) * std,
            "bfc": jnp.zeros((4 * width,), dtype),
            "wcp": jax.random.normal(k4, (width, 4 * width), dtype) * std,
            "bcp": jnp.zeros((width,), dtype),
        })
    return params


def prepare_params(torch_layers, heads, compute_dtype=jnp.bfloat16):
    """PyTorch-layout params -> stacked, transposed, permuted, scale-folded, bf16."""
    W = torch_layers[0]["wproj"].shape[0]
    C = W // heads
    scale = 1.0 / math.sqrt(math.sqrt(C))

    # PyTorch qkv column order is per-head [q_h | k_h | v_h]; re-order to
    # [Q(all heads) | K(all heads) | V(all heads)], heads contiguous inside each.
    perm = np.empty((3 * W,), dtype=np.int64)
    for which in range(3):
        for h in range(heads):
            for c in range(C):
                perm[which * W + h * C + c] = h * 3 * C + which * C + c
    # Fold the attention scale into Q and K columns (weights AND biases).
    col_scale = np.concatenate(
        [np.full(W, scale), np.full(W, scale), np.ones(W)]).astype(np.float32)

    out = {k: [] for k in _PARAM_ORDER}
    for p in torch_layers:
        wqkv = jnp.asarray(p["wqkv"], jnp.float32).T[:, perm] * col_scale[None, :]
        bqkv = jnp.asarray(p["bqkv"], jnp.float32)[perm] * col_scale
        out["ln1_g"].append(jnp.asarray(p["ln1_g"], jnp.float32)[None, :])
        out["ln1_b"].append(jnp.asarray(p["ln1_b"], jnp.float32)[None, :])
        out["wqkv"].append(wqkv.astype(compute_dtype))
        out["bqkv"].append(bqkv[None, :])
        out["wproj"].append(jnp.asarray(p["wproj"], jnp.float32).T.astype(compute_dtype))
        out["bproj"].append(jnp.asarray(p["bproj"], jnp.float32)[None, :])
        out["ln2_g"].append(jnp.asarray(p["ln2_g"], jnp.float32)[None, :])
        out["ln2_b"].append(jnp.asarray(p["ln2_b"], jnp.float32)[None, :])
        out["wfc"].append(jnp.asarray(p["wfc"], jnp.float32).T.astype(compute_dtype))
        out["bfc"].append(jnp.asarray(p["bfc"], jnp.float32)[None, :])
        out["wcp"].append(jnp.asarray(p["wcp"], jnp.float32).T.astype(compute_dtype))
        out["bcp"].append(jnp.asarray(p["bcp"], jnp.float32)[None, :])
    return {k: jnp.stack(v, axis=0) for k, v in out.items()}


# ------------------------- pure-JAX fp32 reference ----------------------------

def _ln_ref(x, g, b, eps=1e-5):
    m = jnp.mean(x, -1, keepdims=True)
    v = jnp.mean((x - m) ** 2, -1, keepdims=True)
    return (x - m) * lax.rsqrt(v + eps) * g + b


def transformer_reference(x, torch_layers, heads):
    for p in torch_layers:
        h = _ln_ref(x, p["ln1_g"], p["ln1_b"])
        qkv = h @ p["wqkv"].T + p["bqkv"]
        B, T, W3 = qkv.shape
        C = W3 // heads // 3
        qkv = qkv.reshape(B, T, heads, 3 * C)
        q, k, v = qkv[..., :C], qkv[..., C:2 * C], qkv[..., 2 * C:]
        scale = 1.0 / math.sqrt(math.sqrt(C))
        w = jnp.einsum("bthc,bshc->bhts", q * scale, k * scale)
        w = jax.nn.softmax(w, axis=-1)
        a = jnp.einsum("bhts,bshc->bthc", w, v).reshape(B, T, heads * C)
        a = a @ p["wproj"].T + p["bproj"]
        x = x + a
        h2 = _ln_ref(x, p["ln2_g"], p["ln2_b"])
        h2 = h2 @ p["wfc"].T + p["bfc"]
        h2 = 0.5 * h2 * (1.0 + lax.erf(h2 / jnp.sqrt(2.0)))   # exact nn.GELU
        h2 = h2 @ p["wcp"].T + p["bcp"]
        x = x + h2
    return x


# ----------------------------------- main -------------------------------------

if __name__ == "__main__":
    B, T, W, H, L = 2, 8, 32, 4, 2   # batch, n_ctx, width, heads, layers

    key = jax.random.PRNGKey(0)
    key, xkey = jax.random.split(key)
    x = jax.random.normal(xkey, (B, T, W), jnp.float32)

    torch_layers = init_torch_params(key, width=W, layers=L)
    stacked = prepare_params(torch_layers, heads=H, compute_dtype=jnp.bfloat16)

    out = transformer_forward(x, stacked, heads=H)
    out = jax.block_until_ready(out)

    ref = transformer_reference(x, torch_layers, heads=H)

    assert out.shape == (B, T, W)
    assert bool(jnp.all(jnp.isfinite(out)))
    max_err = float(jnp.max(jnp.abs(out - ref)))
    assert max_err < 3e-2, f"max abs err {max_err}"
    print("KERNEL_OK")
</pallas_src>

<mosaic_0001>
module attributes {stable_mosaic.version = 11 : i64} {
  func.func @fused_transformer_kernel(%arg0: i32, %arg1: memref<16x32xf32, #tpu.memory_space<vmem>>, %arg2: memref<1x1x32xf32, #tpu.memory_space<vmem>>, %arg3: memref<1x1x32xf32, #tpu.memory_space<vmem>>, %arg4: memref<1x32x96xbf16, #tpu.memory_space<vmem>>, %arg5: memref<1x1x96xf32, #tpu.memory_space<vmem>>, %arg6: memref<1x32x32xbf16, #tpu.memory_space<vmem>>, %arg7: memref<1x1x32xf32, #tpu.memory_space<vmem>>, %arg8: memref<1x1x32xf32, #tpu.memory_space<vmem>>, %arg9: memref<1x1x32xf32, #tpu.memory_space<vmem>>, %arg10: memref<1x32x128xbf16, #tpu.memory_space<vmem>>, %arg11: memref<1x1x128xf32, #tpu.memory_space<vmem>>, %arg12: memref<1x128x32xbf16, #tpu.memory_space<vmem>>, %arg13: memref<1x1x32xf32, #tpu.memory_space<vmem>>, %arg14: memref<16x32xf32, #tpu.memory_space<vmem>>, %arg15: memref<16x32xf32, #tpu.memory_space<vmem>>, %arg16: memref<16x32xf32, #tpu.memory_space<vmem>>) attributes {dimension_semantics = [#tpu.dimension_semantics<arbitrary>], iteration_bounds = array<i64: 2>, scalar_prefetch = 0 : i64, scratch_operands = 2 : i64, tpu.core_type = #tpu.core_type<tc>, window_params = [{pipeline_mode = #tpu.pipeline_mode<synchronous>, transform_indices = @transform_0, window_bounds = array<i64: 16, 32>}, {transform_indices = @transform_1, window_bounds = array<i64: 1, 1, 32>}, {transform_indices = @transform_2, window_bounds = array<i64: 1, 1, 32>}, {transform_indices = @transform_3, window_bounds = array<i64: 1, 32, 96>}, {transform_indices = @transform_4, window_bounds = array<i64: 1, 1, 96>}, {transform_indices = @transform_5, window_bounds = array<i64: 1, 32, 32>}, {transform_indices = @transform_6, window_bounds = array<i64: 1, 1, 32>}, {transform_indices = @transform_7, window_bounds = array<i64: 1, 1, 32>}, {transform_indices = @transform_8, window_bounds = array<i64: 1, 1, 32>}, {transform_indices = @transform_9, window_bounds = array<i64: 1, 32, 128>}, {transform_indices = @transform_10, window_bounds = array<i64: 1, 1, 128>}, {transform_indices = @transform_11, window_bounds = array<i64: 1, 128, 32>}, {transform_indices = @transform_12, window_bounds = array<i64: 1, 1, 32>}, {pipeline_mode = #tpu.pipeline_mode<synchronous>, transform_indices = @transform_13, window_bounds = array<i64: 16, 32>}]} {
    %c0_i32 = arith.constant 0 : i32
    %0 = arith.cmpi eq, %arg0, %c0_i32 : i32
    %1 = arith.extui %0 : i1 to i32
    %c0_i32_0 = arith.constant 0 : i32
    %2 = arith.cmpi ne, %1, %c0_i32_0 : i32
    scf.if %2 {
      %c0_105 = arith.constant 0 : index
      %c0_106 = arith.constant 0 : index
      %266 = vector.load %arg1[%c0_105, %c0_106] : memref<16x32xf32, #tpu.memory_space<vmem>>, vector<16x32xf32>
      %c0_107 = arith.constant 0 : index
      %c0_108 = arith.constant 0 : index
      %267 = vector.load %arg15[%c0_107, %c0_108] : memref<16x32xf32, #tpu.memory_space<vmem>>, vector<16x32xf32>
      tpu.vector_store %arg15[%c0_107, %c0_108], %266 {strides = array<i32>} : memref<16x32xf32, #tpu.memory_space<vmem>>, vector<16x32xf32>,
    } else {
    }
    %c0 = arith.constant 0 : index
    %c0_1 = arith.constant 0 : index
    %3 = vector.load %arg15[%c0, %c0_1] : memref<16x32xf32, #tpu.memory_space<vmem>>, vector<16x32xf32>
    %c0_2 = arith.constant 0 : index
    %c0_3 = arith.constant 0 : index
    %c0_4 = arith.constant 0 : index
    %4 = vector.load %arg2[%c0_2, %c0_3, %c0_4] : memref<1x1x32xf32, #tpu.memory_space<vmem>>, vector<1x1x32xf32>
    %5 = vector.shape_cast %4 : vector<1x1x32xf32> to vector<1x32xf32>
    %c0_5 = arith.constant 0 : index
    %c0_6 = arith.constant 0 : index
    %c0_7 = arith.constant 0 : index
    %6 = vector.load %arg3[%c0_5, %c0_6, %c0_7] : memref<1x1x32xf32, #tpu.memory_space<vmem>>, vector<1x1x32xf32>
    %7 = vector.shape_cast %6 : vector<1x1x32xf32> to vector<1x32xf32>
    %cst = arith.constant dense<0.000000e+00> : vector<16xf32>
    %8 = vector.multi_reduction <add>, %3, %cst [1] : vector<16x32xf32> to vector<16xf32>
    %9 = vector.shape_cast %8 : vector<16xf32> to vector<16x1xf32>
    %cst_8 = arith.constant 3.200000e+01 : f32
    %10 = vector.broadcast %cst_8 : f32 to vector<16x1xf32>
    %11 = arith.divf %9, %10 : vector<16x1xf32>
    %12 = vector.broadcast %11 : vector<16x1xf32> to vector<16x32xf32>
    %13 = arith.subf %3, %12 : vector<16x32xf32>
    %14 = arith.mulf %13, %13 : vector<16x32xf32>
    %cst_9 = arith.constant dense<0.000000e+00> : vector<16xf32>
    %15 = vector.multi_reduction <add>, %14, %cst_9 [1] : vector<16x32xf32> to vector<16xf32>
    %16 = vector.shape_cast %15 : vector<16xf32> to vector<16x1xf32>
    %cst_10 = arith.constant 3.200000e+01 : f32
    %17 = vector.broadcast %cst_10 : f32 to vector<16x1xf32>
    %18 = arith.divf %16, %17 : vector<16x1xf32>
    %cst_11 = arith.constant 9.99999974E-6 : f32
    %19 = vector.broadcast %cst_11 : f32 to vector<16x1xf32>
    %20 = arith.addf %18, %19 : vector<16x1xf32>
    %21 = math.rsqrt %20 : vector<16x1xf32>
    %22 = vector.broadcast %21 : vector<16x1xf32> to vector<16x32xf32>
    %23 = arith.mulf %13, %22 : vector<16x32xf32>
    %24 = vector.broadcast %5 : vector<1x32xf32> to vector<16x32xf32>
    %25 = arith.mulf %23, %24 : vector<16x32xf32>
    %26 = vector.broadcast %7 : vector<1x32xf32> to vector<16x32xf32>
    %27 = arith.addf %25, %26 : vector<16x32xf32>
    %28 = arith.truncf %27 : vector<16x32xf32> to vector<16x32xbf16>
    %c0_12 = arith.constant 0 : index
    %c0_13 = arith.constant 0 : index
    %c0_14 = arith.constant 0 : index
    %29 = vector.load %arg4[%c0_12, %c0_13, %c0_14] : memref<1x32x96xbf16, #tpu.memory_space<vmem>>, vector<1x32x96xbf16>
    %30 = vector.shape_cast %29 : vector<1x32x96xbf16> to vector<32x96xbf16>
    %cst_15 = arith.constant dense<0.000000e+00> : vector<16x96xf32>
    %31 = tpu.matmul %28, %30, %cst_15 {dimension_numbers = #tpu.dot_dimension_numbers<[1], [0], [0], [1], [0, 0, 1, 1], [], []>} : vector<16x32xbf16>, vector<32x96xbf16>, vector<16x96xf32> -> vector<16x96xf32>
    %c0_16 = arith.constant 0 : index
    %c0_17 = arith.constant 0 : index
    %c0_18 = arith.constant 0 : index
    %32 = vector.load %arg5[%c0_16, %c0_17, %c0_18] : memref<1x1x96xf32, #tpu.memory_space<vmem>>, vector<1x1x96xf32>
    %33 = vector.shape_cast %32 : vector<1x1x96xf32> to vector<1x96xf32>
    %34 = vector.broadcast %33 : vector<1x96xf32> to vector<16x96xf32>
    %35 = arith.addf %31, %34 : vector<16x96xf32>
    %36 = vector.extract_strided_slice %35 {offsets = [0, 0], sizes = [8, 32], strides = [1, 1]} : vector<16x96xf32> to vector<8x32xf32>
    %37 = vector.extract_strided_slice %35 {offsets = [0, 64], sizes = [8, 32], strides = [1, 1]} : vector<16x96xf32> to vector<8x32xf32>
    %38 = vector.extract_strided_slice %35 {offsets = [0, 32], sizes = [8, 32], strides = [1, 1]} : vector<16x96xf32> to vector<8x32xf32>
    %39 = tpu.transpose %38, [1, 0] : vector<8x32xf32> -> vector<32x8xf32>
    %40 = arith.truncf %39 : vector<32x8xf32> to vector<32x8xbf16>
    %41 = vector.extract_strided_slice %36 {offsets = [0, 0], sizes = [8, 8], strides = [1, 1]} : vector<8x32xf32> to vector<8x8xf32>
    %42 = arith.truncf %41 : vector<8x8xf32> to vector<8x8xbf16>
    %43 = vector.extract_strided_slice %40 {offsets = [0, 0], sizes = [8, 8], strides = [1, 1]} : vector<32x8xbf16> to vector<8x8xbf16>
    %cst_19 = arith.constant dense<0.000000e+00> : vector<8x8xf32>
    %44 = tpu.matmul %42, %43, %cst_19 {dimension_numbers = #tpu.dot_dimension_numbers<[1], [0], [0], [1], [0, 0, 1, 1], [], []>} : vector<8x8xbf16>, vector<8x8xbf16>, vector<8x8xf32> -> vector<8x8xf32>
    %cst_20 = arith.constant dense<0xFF800000> : vector<8xf32>
    %45 = vector.multi_reduction <maximumf>, %44, %cst_20 [1] : vector<8x8xf32> to vector<8xf32>
    %46 = vector.shape_cast %45 : vector<8xf32> to vector<8x1xf32>
    %47 = vector.broadcast %46 : vector<8x1xf32> to vector<8x8xf32>
    %48 = arith.subf %44, %47 : vector<8x8xf32>
    %49 = math.exp %48 : vector<8x8xf32>
    %cst_21 = arith.constant dense<0.000000e+00> : vector<8xf32>
    %50 = vector.multi_reduction <add>, %49, %cst_21 [1] : vector<8x8xf32> to vector<8xf32>
    %51 = vector.shape_cast %50 : vector<8xf32> to vector<8x1xf32>
    %52 = arith.truncf %49 : vector<8x8xf32> to vector<8x8xbf16>
    %53 = vector.extract_strided_slice %37 {offsets = [0, 0], sizes = [8, 8], strides = [1, 1]} : vector<8x32xf32> to vector<8x8xf32>
    %54 = arith.truncf %53 : vector<8x8xf32> to vector<8x8xbf16>
    %cst_22 = arith.constant dense<0.000000e+00> : vector<8x8xf32>
    %55 = tpu.matmul %52, %54, %cst_22 {dimension_numbers = #tpu.dot_dimension_numbers<[1], [0], [0], [1], [0, 0, 1, 1], [], []>} : vector<8x8xbf16>, vector<8x8xbf16>, vector<8x8xf32> -> vector<8x8xf32>
    %56 = tpu.reciprocal %51 {approx = true} : vector<8x1xf32> -> vector<8x1xf32>
    %57 = vector.broadcast %56 : vector<8x1xf32> to vector<8x8xf32>
    %58 = arith.mulf %55, %57 : vector<8x8xf32>
    %c0_23 = arith.constant 0 : index
    %c0_24 = arith.constant 0 : index
    %59 = vector.load %arg16[%c0_23, %c0_24] : memref<16x32xf32, #tpu.memory_space<vmem>>, vector<8x8xf32>
    tpu.vector_store %arg16[%c0_23, %c0_24], %58 {strides = array<i32>} : memref<16x32xf32, #tpu.memory_space<vmem>>, vector<8x8xf32>,
    %60 = vector.extract_strided_slice %36 {offsets = [0, 8], sizes = [8, 8], strides = [1, 1]} : vector<8x32xf32> to vector<8x8xf32>
    %61 = arith.truncf %60 : vector<8x8xf32> to vector<8x8xbf16>
    %62 = vector.extract_strided_slice %40 {offsets = [8, 0], sizes = [8, 8], strides = [1, 1]} : vector<32x8xbf16> to vector<8x8xbf16>
    %cst_25 = arith.constant dense<0.000000e+00> : vector<8x8xf32>
    %63 = tpu.matmul %61, %62, %cst_25 {dimension_numbers = #tpu.dot_dimension_numbers<[1], [0], [0], [1], [0, 0, 1, 1], [], []>} : vector<8x8xbf16>, vector<8x8xbf16>, vector<8x8xf32> -> vector<8x8xf32>
    %cst_26 = arith.constant dense<0xFF800000> : vector<8xf32>
    %64 = vector.multi_reduction <maximumf>, %63, %cst_26 [1] : vector<8x8xf32> to vector<8xf32>
    %65 = vector.shape_cast %64 : vector<8xf32> to vector<8x1xf32>
    %66 = vector.broadcast %65 : vector<8x1xf32> to vector<8x8xf32>
    %67 = arith.subf %63, %66 : vector<8x8xf32>
    %68 = math.exp %67 : vector<8x8xf32>
    %cst_27 = arith.constant dense<0.000000e+00> : vector<8xf32>
    %69 = vector.multi_reduction <add>, %68, %cst_27 [1] : vector<8x8xf32> to vector<8xf32>
    %70 = vector.shape_cast %69 : vector<8xf32> to vector<8x1xf32>
    %71 = arith.truncf %68 : vector<8x8xf32> to vector<8x8xbf16>
    %72 = vector.extract_strided_slice %37 {offsets = [0, 8], sizes = [8, 8], strides = [1, 1]} : vector<8x32xf32> to vector<8x8xf32>
    %73 = arith.truncf %72 : vector<8x8xf32> to vector<8x8xbf16>
    %cst_28 = arith.constant dense<0.000000e+00> : vector<8x8xf32>
    %74 = tpu.matmul %71, %73, %cst_28 {dimension_numbers = #tpu.dot_dimension_numbers<[1], [0], [0], [1], [0, 0, 1, 1], [], []>} : vector<8x8xbf16>, vector<8x8xbf16>, vector<8x8xf32> -> vector<8x8xf32>
    %75 = tpu.reciprocal %70 {approx = true} : vector<8x1xf32> -> vector<8x1xf32>
    %76 = vector.broadcast %75 : vector<8x1xf32> to vector<8x8xf32>
    %77 = arith.mulf %74, %76 : vector<8x8xf32>
    %c0_29 = arith.constant 0 : index
    %c8 = arith.constant 8 : index
    %78 = vector.load %arg16[%c0_29, %c8] : memref<16x32xf32, #tpu.memory_space<vmem>>, vector<8x8xf32>
    tpu.vector_store %arg16[%c0_29, %c8], %77 {strides = array<i32>} : memref<16x32xf32, #tpu.memory_space<vmem>>, vector<8x8xf32>,
    %79 = vector.extract_strided_slice %36 {offsets = [0, 16], sizes = [8, 8], strides = [1, 1]} : vector<8x32xf32> to vector<8x8xf32>
    %80 = arith.truncf %79 : vector<8x8xf32> to vector<8x8xbf16>
    %81 = vector.extract_strided_slice %40 {offsets = [16, 0], sizes = [8, 8], strides = [1, 1]} : vector<32x8xbf16> to vector<8x8xbf16>
    %cst_30 = arith.constant dense<0.000000e+00> : vector<8x8xf32>
    %82 = tpu.matmul %80, %81, %cst_30 {dimension_numbers = #tpu.dot_dimension_numbers<[1], [0], [0], [1], [0, 0, 1, 1], [], []>} : vector<8x8xbf16>, vector<8x8xbf16>, vector<8x8xf32> -> vector<8x8xf32>
    %cst_31 = arith.constant dense<0xFF800000> : vector<8xf32>
    %83 = vector.multi_reduction <maximumf>, %82, %cst_31 [1] : vector<8x8xf32> to vector<8xf32>
    %84 = vector.shape_cast %83 : vector<8xf32> to vector<8x1xf32>
    %85 = vector.broadcast %84 : vector<8x1xf32> to vector<8x8xf32>
    %86 = arith.subf %82, %85 : vector<8x8xf32>
    %87 = math.exp %86 : vector<8x8xf32>
    %cst_32 = arith.constant dense<0.000000e+00> : vector<8xf32>
    %88 = vector.multi_reduction <add>, %87, %cst_32 [1] : vector<8x8xf32> to vector<8xf32>
    %89 = vector.shape_cast %88 : vector<8xf32> to vector<8x1xf32>
    %90 = arith.truncf %87 : vector<8x8xf32> to vector<8x8xbf16>
    %91 = vector.extract_strided_slice %37 {offsets = [0, 16], sizes = [8, 8], strides = [1, 1]} : vector<8x32xf32> to vector<8x8xf32>
    %92 = arith.truncf %91 : vector<8x8xf32> to vector<8x8xbf16>
    %cst_33 = arith.constant dense<0.000000e+00> : vector<8x8xf32>
    %93 = tpu.matmul %90, %92, %cst_33 {dimension_numbers = #tpu.dot_dimension_numbers<[1], [0], [0], [1], [0, 0, 1, 1], [], []>} : vector<8x8xbf16>, vector<8x8xbf16>, vector<8x8xf32> -> vector<8x8xf32>
    %94 = tpu.reciprocal %89 {approx = true} : vector<8x1xf32> -> vector<8x1xf32>
    %95 = vector.broadcast %94 : vector<8x1xf32> to vector<8x8xf32>
    %96 = arith.mulf %93, %95 : vector<8x8xf32>
    %c0_34 = arith.constant 0 : index
    %c16 = arith.constant 16 : index
    %97 = vector.load %arg16[%c0_34, %c16] : memref<16x32xf32, #tpu.memory_space<vmem>>, vector<8x8xf32>
    tpu.vector_store %arg16[%c0_34, %c16], %96 {strides = array<i32>} : memref<16x32xf32, #tpu.memory_space<vmem>>, vector<8x8xf32>,
    %98 = vector.extract_strided_slice %36 {offsets = [0, 24], sizes = [8, 8], strides = [1, 1]} : vector<8x32xf32> to vector<8x8xf32>
    %99 = arith.truncf %98 : vector<8x8xf32> to vector<8x8xbf16>
    %100 = vector.extract_strided_slice %40 {offsets = [24, 0], sizes = [8, 8], strides = [1, 1]} : vector<32x8xbf16> to vector<8x8xbf16>
    %cst_35 = arith.constant dense<0.000000e+00> : vector<8x8xf32>
    %101 = tpu.matmul %99, %100, %cst_35 {dimension_numbers = #tpu.dot_dimension_numbers<[1], [0], [0], [1], [0, 0, 1, 1], [], []>} : vector<8x8xbf16>, vector<8x8xbf16>, vector<8x8xf32> -> vector<8x8xf32>
    %cst_36 = arith.constant dense<0xFF800000> : vector<8xf32>
    %102 = vector.multi_reduction <maximumf>, %101, %cst_36 [1] : vector<8x8xf32> to vector<8xf32>
    %103 = vector.shape_cast %102 : vector<8xf32> to vector<8x1xf32>
    %104 = vector.broadcast %103 : vector<8x1xf32> to vector<8x8xf32>
    %105 = arith.subf %101, %104 : vector<8x8xf32>
    %106 = math.exp %105 : vector<8x8xf32>
    %cst_37 = arith.constant dense<0.000000e+00> : vector<8xf32>
    %107 = vector.multi_reduction <add>, %106, %cst_37 [1] : vector<8x8xf32> to vector<8xf32>
    %108 = vector.shape_cast %107 : vector<8xf32> to vector<8x1xf32>
    %109 = arith.truncf %106 : vector<8x8xf32> to vector<8x8xbf16>
    %110 = vector.extract_strided_slice %37 {offsets = [0, 24], sizes = [8, 8], strides = [1, 1]} : vector<8x32xf32> to vector<8x8xf32>
    %111 = arith.truncf %110 : vector<8x8xf32> to vector<8x8xbf16>
    %cst_38 = arith.constant dense<0.000000e+00> : vector<8x8xf32>
    %112 = tpu.matmul %109, %111, %cst_38 {dimension_numbers = #tpu.dot_dimension_numbers<[1], [0], [0], [1], [0, 0, 1, 1], [], []>} : vector<8x8xbf16>, vector<8x8xbf16>, vector<8x8xf32> -> vector<8x8xf32>
    %113 = tpu.reciprocal %108 {approx = true} : vector<8x1xf32> -> vector<8x1xf32>
    %114 = vector.broadcast %113 : vector<8x1xf32> to vector<8x8xf32>
    %115 = arith.mulf %112, %114 : vector<8x8xf32>
    %c0_39 = arith.constant 0 : index
    %c24 = arith.constant 24 : index
    %116 = vector.load %arg16[%c0_39, %c24] : memref<16x32xf32, #tpu.memory_space<vmem>>, vector<8x8xf32>
    tpu.vector_store %arg16[%c0_39, %c24], %115 {strides = array<i32>} : memref<16x32xf32, #tpu.memory_space<vmem>>, vector<8x8xf32>,
    %117 = vector.extract_strided_slice %35 {offsets = [8, 0], sizes = [8, 32], strides = [1, 1]} : vector<16x96xf32> to vector<8x32xf32>
    %118 = vector.extract_strided_slice %35 {offsets = [8, 64], sizes = [8, 32], strides = [1, 1]} : vector<16x96xf32> to vector<8x32xf32>
    %119 = vector.extract_strided_slice %35 {offsets = [8, 32], sizes = [8, 32], strides = [1, 1]} : vector<16x96xf32> to vector<8x32xf32>
    %120 = tpu.transpose %119, [1, 0] : vector<8x32xf32> -> vector<32x8xf32>
    %121 = arith.truncf %120 : vector<32x8xf32> to vector<32x8xbf16>
    %122 = vector.extract_strided_slice %117 {offsets = [0, 0], sizes = [8, 8], strides = [1, 1]} : vector<8x32xf32> to vector<8x8xf32>
    %123 = arith.truncf %122 : vector<8x8xf32> to vector<8x8xbf16>
    %124 = vector.extract_strided_slice %121 {offsets = [0, 0], sizes = [8, 8], strides = [1, 1]} : vector<32x8xbf16> to vector<8x8xbf16>
    %cst_40 = arith.constant dense<0.000000e+00> : vector<8x8xf32>
    %125 = tpu.matmul %123, %124, %cst_40 {dimension_numbers = #tpu.dot_dimension_numbers<[1], [0], [0], [1], [0, 0, 1, 1], [], []>} : vector<8x8xbf16>, vector<8x8xbf16>, vector<8x8xf32> -> vector<8x8xf32>
    %cst_41 = arith.constant dense<0xFF800000> : vector<8xf32>
    %126 = vector.multi_reduction <maximumf>, %125, %cst_41 [1] : vector<8x8xf32> to vector<8xf32>
    %127 = vector.shape_cast %126 : vector<8xf32> to vector<8x1xf32>
    %128 = vector.broadcast %127 : vector<8x1xf32> to vector<8x8xf32>
    %129 = arith.subf %125, %128 : vector<8x8xf32>
    %130 = math.exp %129 : vector<8x8xf32>
    %cst_42 = arith.constant dense<0.000000e+00> : vector<8xf32>
    %131 = vector.multi_reduction <add>, %130, %cst_42 [1] : vector<8x8xf32> to vector<8xf32>
    %132 = vector.shape_cast %131 : vector<8xf32> to vector<8x1xf32>
    %133 = arith.truncf %130 : vector<8x8xf32> to vector<8x8xbf16>
    %134 = vector.extract_strided_slice %118 {offsets = [0, 0], sizes = [8, 8], strides = [1, 1]} : vector<8x32xf32> to vector<8x8xf32>
    %135 = arith.truncf %134 : vector<8x8xf32> to vector<8x8xbf16>
    %cst_43 = arith.constant dense<0.000000e+00> : vector<8x8xf32>
    %136 = tpu.matmul %133, %135, %cst_43 {dimension_numbers = #tpu.dot_dimension_numbers<[1], [0], [0], [1], [0, 0, 1, 1], [], []>} : vector<8x8xbf16>, vector<8x8xbf16>, vector<8x8xf32> -> vector<8x8xf32>
    %137 = tpu.reciprocal %132 {approx = true} : vector<8x1xf32> -> vector<8x1xf32>
    %138 = vector.broadcast %137 : vector<8x1xf32> to vector<8x8xf32>
    %139 = arith.mulf %136, %138 : vector<8x8xf32>
    %c8_44 = arith.constant 8 : index
    %c0_45 = arith.constant 0 : index
    %140 = vector.load %arg16[%c8_44, %c0_45] : memref<16x32xf32, #tpu.memory_space<vmem>>, vector<8x8xf32>
    tpu.vector_store %arg16[%c8_44, %c0_45], %139 {strides = array<i32>} : memref<16x32xf32, #tpu.memory_space<vmem>>, vector<8x8xf32>,
    %141 = vector.extract_strided_slice %117 {offsets = [0, 8], sizes = [8, 8], strides = [1, 1]} : vector<8x32xf32> to vector<8x8xf32>
    %142 = arith.truncf %141 : vector<8x8xf32> to vector<8x8xbf16>
    %143 = vector.extract_strided_slice %121 {offsets = [8, 0], sizes = [8, 8], strides = [1, 1]} : vector<32x8xbf16> to vector<8x8xbf16>
    %cst_46 = arith.constant dense<0.000000e+00> : vector<8x8xf32>
    %144 = tpu.matmul %142, %143, %cst_46 {dimension_numbers = #tpu.dot_dimension_numbers<[1], [0], [0], [1], [0, 0, 1, 1], [], []>} : vector<8x8xbf16>, vector<8x8xbf16>, vector<8x8xf32> -> vector<8x8xf32>
    %cst_47 = arith.constant dense<0xFF800000> : vector<8xf32>
    %145 = vector.multi_reduction <maximumf>, %144, %cst_47 [1] : vector<8x8xf32> to vector<8xf32>
    %146 = vector.shape_cast %145 : vector<8xf32> to vector<8x1xf32>
    %147 = vector.broadcast %146 : vector<8x1xf32> to vector<8x8xf32>
    %148 = arith.subf %144, %147 : vector<8x8xf32>
    %149 = math.exp %148 : vector<8x8xf32>
    %cst_48 = arith.constant dense<0.000000e+00> : vector<8xf32>
    %150 = vector.multi_reduction <add>, %149, %cst_48 [1] : vector<8x8xf32> to vector<8xf32>
    %151 = vector.shape_cast %150 : vector<8xf32> to vector<8x1xf32>
    %152 = arith.truncf %149 : vector<8x8xf32> to vector<8x8xbf16>
    %153 = vector.extract_strided_slice %118 {offsets = [0, 8], sizes = [8, 8], strides = [1, 1]} : vector<8x32xf32> to vector<8x8xf32>
    %154 = arith.truncf %153 : vector<8x8xf32> to vector<8x8xbf16>
    %cst_49 = arith.constant dense<0.000000e+00> : vector<8x8xf32>
    %155 = tpu.matmul %152, %154, %cst_49 {dimension_numbers = #tpu.dot_dimension_numbers<[1], [0], [0], [1], [0, 0, 1, 1], [], []>} : vector<8x8xbf16>, vector<8x8xbf16>, vector<8x8xf32> -> vector<8x8xf32>
    %156 = tpu.reciprocal %151 {approx = true} : vector<8x1xf32> -> vector<8x1xf32>
    %157 = vector.broadcast %156 : vector<8x1xf32> to vector<8x8xf32>
    %158 = arith.mulf %155, %157 : vector<8x8xf32>
    %c8_50 = arith.constant 8 : index
    %c8_51 = arith.constant 8 : index
    %159 = vector.load %arg16[%c8_50, %c8_51] : memref<16x32xf32, #tpu.memory_space<vmem>>, vector<8x8xf32>
    tpu.vector_store %arg16[%c8_50, %c8_51], %158 {strides = array<i32>} : memref<16x32xf32, #tpu.memory_space<vmem>>, vector<8x8xf32>,
    %160 = vector.extract_strided_slice %117 {offsets = [0, 16], sizes = [8, 8], strides = [1, 1]} : vector<8x32xf32> to vector<8x8xf32>
    %161 = arith.truncf %160 : vector<8x8xf32> to vector<8x8xbf16>
    %162 = vector.extract_strided_slice %121 {offsets = [16, 0], sizes = [8, 8], strides = [1, 1]} : vector<32x8xbf16> to vector<8x8xbf16>
    %cst_52 = arith.constant dense<0.000000e+00> : vector<8x8xf32>
    %163 = tpu.matmul %161, %162, %cst_52 {dimension_numbers = #tpu.dot_dimension_numbers<[1], [0], [0], [1], [0, 0, 1, 1], [], []>} : vector<8x8xbf16>, vector<8x8xbf16>, vector<8x8xf32> -> vector<8x8xf32>
    %cst_53 = arith.constant dense<0xFF800000> : vector<8xf32>
    %164 = vector.multi_reduction <maximumf>, %163, %cst_53 [1] : vector<8x8xf32> to vector<8xf32>
    %165 = vector.shape_cast %164 : vector<8xf32> to vector<8x1xf32>
    %166 = vector.broadcast %165 : vector<8x1xf32> to vector<8x8xf32>
    %167 = arith.subf %163, %166 : vector<8x8xf32>
    %168 = math.exp %167 : vector<8x8xf32>
    %cst_54 = arith.constant dense<0.000000e+00> : vector<8xf32>
    %169 = vector.multi_reduction <add>, %168, %cst_54 [1] : vector<8x8xf32> to vector<8xf32>
    %170 = vector.shape_cast %169 : vector<8xf32> to vector<8x1xf32>
    %171 = arith.truncf %168 : vector<8x8xf32> to vector<8x8xbf16>
    %172 = vector.extract_strided_slice %118 {offsets = [0, 16], sizes = [8, 8], strides = [1, 1]} : vector<8x32xf32> to vector<8x8xf32>
    %173 = arith.truncf %172 : vector<8x8xf32> to vector<8x8xbf16>
    %cst_55 = arith.constant dense<0.000000e+00> : vector<8x8xf32>
    %174 = tpu.matmul %171, %173, %cst_55 {dimension_numbers = #tpu.dot_dimension_numbers<[1], [0], [0], [1], [0, 0, 1, 1], [], []>} : vector<8x8xbf16>, vector<8x8xbf16>, vector<8x8xf32> -> vector<8x8xf32>
    %175 = tpu.reciprocal %170 {approx = true} : vector<8x1xf32> -> vector<8x1xf32>
    %176 = vector.broadcast %175 : vector<8x1xf32> to vector<8x8xf32>
    %177 = arith.mulf %174, %176 : vector<8x8xf32>
    %c8_56 = arith.constant 8 : index
    %c16_57 = arith.constant 16 : index
    %178 = vector.load %arg16[%c8_56, %c16_57] : memref<16x32xf32, #tpu.memory_space<vmem>>, vector<8x8xf32>
    tpu.vector_store %arg16[%c8_56, %c16_57], %177 {strides = array<i32>} : memref<16x32xf32, #tpu.memory_space<vmem>>, vector<8x8xf32>,
    %179 = vector.extract_strided_slice %117 {offsets = [0, 24], sizes = [8, 8], strides = [1, 1]} : vector<8x32xf32> to vector<8x8xf32>
    %180 = arith.truncf %179 : vector<8x8xf32> to vector<8x8xbf16>
    %181 = vector.extract_strided_slice %121 {offsets = [24, 0], sizes = [8, 8], strides = [1, 1]} : vector<32x8xbf16> to vector<8x8xbf16>
    %cst_58 = arith.constant dense<0.000000e+00> : vector<8x8xf32>
    %182 = tpu.matmul %180, %181, %cst_58 {dimension_numbers = #tpu.dot_dimension_numbers<[1], [0], [0], [1], [0, 0, 1, 1], [], []>} : vector<8x8xbf16>, vector<8x8xbf16>, vector<8x8xf32> -> vector<8x8xf32>
    %cst_59 = arith.constant dense<0xFF800000> : vector<8xf32>
    %183 = vector.multi_reduction <maximumf>, %182, %cst_59 [1] : vector<8x8xf32> to vector<8xf32>
    %184 = vector.shape_cast %183 : vector<8xf32> to vector<8x1xf32>
    %185 = vector.broadcast %184 : vector<8x1xf32> to vector<8x8xf32>
    %186 = arith.subf %182, %185 : vector<8x8xf32>
    %187 = math.exp %186 : vector<8x8xf32>
    %cst_60 = arith.constant dense<0.000000e+00> : vector<8xf32>
    %188 = vector.multi_reduction <add>, %187, %cst_60 [1] : vector<8x8xf32> to vector<8xf32>
    %189 = vector.shape_cast %188 : vector<8xf32> to vector<8x1xf32>
    %190 = arith.truncf %187 : vector<8x8xf32> to vector<8x8xbf16>
    %191 = vector.extract_strided_slice %118 {offsets = [0, 24], sizes = [8, 8], strides = [1, 1]} : vector<8x32xf32> to vector<8x8xf32>
    %192 = arith.truncf %191 : vector<8x8xf32> to vector<8x8xbf16>
    %cst_61 = arith.constant dense<0.000000e+00> : vector<8x8xf32>
    %193 = tpu.matmul %190, %192, %cst_61 {dimension_numbers = #tpu.dot_dimension_numbers<[1], [0], [0], [1], [0, 0, 1, 1], [], []>} : vector<8x8xbf16>, vector<8x8xbf16>, vector<8x8xf32> -> vector<8x8xf32>
    %194 = tpu.reciprocal %189 {approx = true} : vector<8x1xf32> -> vector<8x1xf32>
    %195 = vector.broadcast %194 : vector<8x1xf32> to vector<8x8xf32>
    %196 = arith.mulf %193, %195 : vector<8x8xf32>
    %c8_62 = arith.constant 8 : index
    %c24_63 = arith.constant 24 : index
    %197 = vector.load %arg16[%c8_62, %c24_63] : memref<16x32xf32, #tpu.memory_space<vmem>>, vector<8x8xf32>
    tpu.vector_store %arg16[%c8_62, %c24_63], %196 {strides = array<i32>} : memref<16x32xf32, #tpu.memory_space<vmem>>, vector<8x8xf32>,
    %c0_64 = arith.constant 0 : index
    %c0_65 = arith.constant 0 : index
    %198 = vector.load %arg16[%c0_64, %c0_65] : memref<16x32xf32, #tpu.memory_space<vmem>>, vector<16x32xf32>
    %199 = arith.truncf %198 : vector<16x32xf32> to vector<16x32xbf16>
    %c0_66 = arith.constant 0 : index
    %c0_67 = arith.constant 0 : index
    %c0_68 = arith.constant 0 : index
    %200 = vector.load %arg6[%c0_66, %c0_67, %c0_68] : memref<1x32x32xbf16, #tpu.memory_space<vmem>>, vector<1x32x32xbf16>
    %201 = vector.shape_cast %200 : vector<1x32x32xbf16> to vector<32x32xbf16>
    %cst_69 = arith.constant dense<0.000000e+00> : vector<16x32xf32>
    %202 = tpu.matmul %199, %201, %cst_69 {dimension_numbers = #tpu.dot_dimension_numbers<[1], [0], [0], [1], [0, 0, 1, 1], [], []>} : vector<16x32xbf16>, vector<32x32xbf16>, vector<16x32xf32> -> vector<16x32xf32>
    %c0_70 = arith.constant 0 : index
    %c0_71 = arith.constant 0 : index
    %c0_72 = arith.constant 0 : index
    %203 = vector.load %arg7[%c0_70, %c0_71, %c0_72] : memref<1x1x32xf32, #tpu.memory_space<vmem>>, vector<1x1x32xf32>
    %204 = vector.shape_cast %203 : vector<1x1x32xf32> to vector<1x32xf32>
    %205 = vector.broadcast %204 : vector<1x32xf32> to vector<16x32xf32>
    %206 = arith.addf %202, %205 : vector<16x32xf32>
    %207 = arith.addf %3, %206 : vector<16x32xf32>
    %c0_73 = arith.constant 0 : index
    %c0_74 = arith.constant 0 : index
    %c0_75 = arith.constant 0 : index
    %208 = vector.load %arg8[%c0_73, %c0_74, %c0_75] : memref<1x1x32xf32, #tpu.memory_space<vmem>>, vector<1x1x32xf32>
    %209 = vector.shape_cast %208 : vector<1x1x32xf32> to vector<1x32xf32>
    %c0_76 = arith.constant 0 : index
    %c0_77 = arith.constant 0 : index
    %c0_78 = arith.constant 0 : index
    %210 = vector.load %arg9[%c0_76, %c0_77, %c0_78] : memref<1x1x32xf32, #tpu.memory_space<vmem>>, vector<1x1x32xf32>
    %211 = vector.shape_cast %210 : vector<1x1x32xf32> to vector<1x32xf32>
    %cst_79 = arith.constant dense<0.000000e+00> : vector<16xf32>
    %212 = vector.multi_reduction <add>, %207, %cst_79 [1] : vector<16x32xf32> to vector<16xf32>
    %213 = vector.shape_cast %212 : vector<16xf32> to vector<16x1xf32>
    %cst_80 = arith.constant 3.200000e+01 : f32
    %214 = vector.broadcast %cst_80 : f32 to vector<16x1xf32>
    %215 = arith.divf %213, %214 : vector<16x1xf32>
    %216 = vector.broadcast %215 : vector<16x1xf32> to vector<16x32xf32>
    %217 = arith.subf %207, %216 : vector<16x32xf32>
    %218 = arith.mulf %217, %217 : vector<16x32xf32>
    %cst_81 = arith.constant dense<0.000000e+00> : vector<16xf32>
    %219 = vector.multi_reduction <add>, %218, %cst_81 [1] : vector<16x32xf32> to vector<16xf32>
    %220 = vector.shape_cast %219 : vector<16xf32> to vector<16x1xf32>
    %cst_82 = arith.constant 3.200000e+01 : f32
    %221 = vector.broadcast %cst_82 : f32 to vector<16x1xf32>
    %222 = arith.divf %220, %221 : vector<16x1xf32>
    %cst_83 = arith.constant 9.99999974E-6 : f32
    %223 = vector.broadcast %cst_83 : f32 to vector<16x1xf32>
    %224 = arith.addf %222, %223 : vector<16x1xf32>
    %225 = math.rsqrt %224 : vector<16x1xf32>
    %226 = vector.broadcast %225 : vector<16x1xf32> to vector<16x32xf32>
    %227 = arith.mulf %217, %226 : vector<16x32xf32>
    %228 = vector.broadcast %209 : vector<1x32xf32> to vector<16x32xf32>
    %229 = arith.mulf %227, %228 : vector<16x32xf32>
    %230 = vector.broadcast %211 : vector<1x32xf32> to vector<16x32xf32>
    %231 = arith.addf %229, %230 : vector<16x32xf32>
    %232 = arith.truncf %231 : vector<16x32xf32> to vector<16x32xbf16>
    %c0_84 = arith.constant 0 : index
    %c0_85 = arith.constant 0 : index
    %c0_86 = arith.constant 0 : index
    %233 = vector.load %arg10[%c0_84, %c0_85, %c0_86] : memref<1x32x128xbf16, #tpu.memory_space<vmem>>, vector<1x32x128xbf16>
    %234 = vector.shape_cast %233 : vector<1x32x128xbf16> to vector<32x128xbf16>
    %cst_87 = arith.constant dense<0.000000e+00> : vector<16x128xf32>
    %235 = tpu.matmul %232, %234, %cst_87 {dimension_numbers = #tpu.dot_dimension_numbers<[1], [0], [0], [1], [0, 0, 1, 1], [], []>} : vector<16x32xbf16>, vector<32x128xbf16>, vector<16x128xf32> -> vector<16x128xf32>
    %c0_88 = arith.constant 0 : index
    %c0_89 = arith.constant 0 : index
    %c0_90 = arith.constant 0 : index
    %236 = vector.load %arg11[%c0_88, %c0_89, %c0_90] : memref<1x1x128xf32, #tpu.memory_space<vmem>>, vector<1x1x128xf32>
    %237 = vector.shape_cast %236 : vector<1x1x128xf32> to vector<1x128xf32>
    %238 = vector.broadcast %237 : vector<1x128xf32> to vector<16x128xf32>
    %239 = arith.addf %235, %238 : vector<16x128xf32>
    %cst_91 = arith.constant 5.000000e-01 : f32
    %240 = vector.broadcast %cst_91 : f32 to vector<16x128xf32>
    %241 = arith.mulf %240, %239 : vector<16x128xf32>
    %cst_92 = arith.constant 4.471500e-02 : f32
    %242 = vector.broadcast %cst_92 : f32 to vector<16x128xf32>
    %243 = arith.mulf %242, %239 : vector<16x128xf32>
    %244 = arith.mulf %243, %239 : vector<16x128xf32>
    %245 = arith.mulf %244, %239 : vector<16x128xf32>
    %246 = arith.addf %239, %245 : vector<16x128xf32>
    %cst_93 = arith.constant 0.797884583 : f32
    %247 = vector.broadcast %cst_93 : f32 to vector<16x128xf32>
    %248 = arith.mulf %247, %246 : vector<16x128xf32>
    %249 = math.tanh %248 : vector<16x128xf32>
    %cst_94 = arith.constant 1.000000e+00 : f32
    %250 = vector.broadcast %cst_94 : f32 to vector<16x128xf32>
    %251 = arith.addf %250, %249 : vector<16x128xf32>
    %252 = arith.mulf %241, %251 : vector<16x128xf32>
    %253 = arith.truncf %252 : vector<16x128xf32> to vector<16x128xbf16>
    %c0_95 = arith.constant 0 : index
    %c0_96 = arith.constant 0 : index
    %c0_97 = arith.constant 0 : index
    %254 = vector.load %arg12[%c0_95, %c0_96, %c0_97] : memref<1x128x32xbf16, #tpu.memory_space<vmem>>, vector<1x128x32xbf16>
    %255 = vector.shape_cast %254 : vector<1x128x32xbf16> to vector<128x32xbf16>
    %cst_98 = arith.constant dense<0.000000e+00> : vector<16x32xf32>
    %256 = tpu.matmul %253, %255, %cst_98 {dimension_numbers = #tpu.dot_dimension_numbers<[1], [0], [0], [1], [0, 0, 1, 1], [], []>} : vector<16x128xbf16>, vector<128x32xbf16>, vector<16x32xf32> -> vector<16x32xf32>
    %257 = arith.addf %207, %256 : vector<16x32xf32>
    %c0_99 = arith.constant 0 : index
    %c0_100 = arith.constant 0 : index
    %c0_101 = arith.constant 0 : index
    %258 = vector.load %arg13[%c0_99, %c0_100, %c0_101] : memref<1x1x32xf32, #tpu.memory_space<vmem>>, vector<1x1x32xf32>
    %259 = vector.shape_cast %258 : vector<1x1x32xf32> to vector<1x32xf32>
    %260 = vector.broadcast %259 : vector<1x32xf32> to vector<16x32xf32>
    %261 = arith.addf %257, %260 : vector<16x32xf32>
    %c0_102 = arith.constant 0 : index
    %c0_103 = arith.constant 0 : index
    %262 = vector.load %arg15[%c0_102, %c0_103] : memref<16x32xf32, #tpu.memory_space<vmem>>, vector<16x32xf32>
    tpu.vector_store %arg15[%c0_102, %c0_103], %261 {strides = array<i32>} : memref<16x32xf32, #tpu.memory_space<vmem>>, vector<16x32xf32>,
    %c1_i32 = arith.constant 1 : i32
    %263 = arith.cmpi eq, %arg0, %c1_i32 : i32
    %264 = arith.extui %263 : i1 to i32
    %c0_i32_104 = arith.constant 0 : i32
    %265 = arith.cmpi ne, %264, %c0_i32_104 : i32
    scf.if %265 {
      %c0_105 = arith.constant 0 : index
      %c0_106 = arith.constant 0 : index
      %266 = vector.load %arg15[%c0_105, %c0_106] : memref<16x32xf32, #tpu.memory_space<vmem>>, vector<16x32xf32>
      %c0_107 = arith.constant 0 : index
      %c0_108 = arith.constant 0 : index
      %267 = vector.load %arg14[%c0_107, %c0_108] : memref<16x32xf32, #tpu.memory_space<vmem>>, vector<16x32xf32>
      tpu.vector_store %arg14[%c0_107, %c0_108], %266 {strides = array<i32>} : memref<16x32xf32, #tpu.memory_space<vmem>>, vector<16x32xf32>,
    } else {
    }
    return
  }
  func.func @transform_0(%arg0: i32) -> (i32, i32) {
    %c0_i32 = arith.constant 0 : i32
    %c0_i32_0 = arith.constant 0 : i32
    %c0_i32_1 = arith.constant 0 : i32
    return %c0_i32, %c0_i32_0 : i32, i32
  }
  func.func @transform_1(%arg0: i32) -> (i32, i32, i32) {
    %c0_i32 = arith.constant 0 : i32
    %c0_i32_0 = arith.constant 0 : i32
    %c0_i32_1 = arith.constant 0 : i32
    return %arg0, %c0_i32, %c0_i32_0 : i32, i32, i32
  }
  func.func @transform_2(%arg0: i32) -> (i32, i32, i32) {
    %c0_i32 = arith.constant 0 : i32
    %c0_i32_0 = arith.constant 0 : i32
    %c0_i32_1 = arith.constant 0 : i32
    return %arg0, %c0_i32, %c0_i32_0 : i32, i32, i32
  }
  func.func @transform_3(%arg0: i32) -> (i32, i32, i32) {
    %c0_i32 = arith.constant 0 : i32
    %c0_i32_0 = arith.constant 0 : i32
    %c0_i32_1 = arith.constant 0 : i32
    return %arg0, %c0_i32, %c0_i32_0 : i32, i32, i32
  }
  func.func @transform_4(%arg0: i32) -> (i32, i32, i32) {
    %c0_i32 = arith.constant 0 : i32
    %c0_i32_0 = arith.constant 0 : i32
    %c0_i32_1 = arith.constant 0 : i32
    return %arg0, %c0_i32, %c0_i32_0 : i32, i32, i32
  }
  func.func @transform_5(%arg0: i32) -> (i32, i32, i32) {
    %c0_i32 = arith.constant 0 : i32
    %c0_i32_0 = arith.constant 0 : i32
    %c0_i32_1 = arith.constant 0 : i32
    return %arg0, %c0_i32, %c0_i32_0 : i32, i32, i32
  }
  func.func @transform_6(%arg0: i32) -> (i32, i32, i32) {
    %c0_i32 = arith.constant 0 : i32
    %c0_i32_0 = arith.constant 0 : i32
    %c0_i32_1 = arith.constant 0 : i32
    return %arg0, %c0_i32, %c0_i32_0 : i32, i32, i32
  }
  func.func @transform_7(%arg0: i32) -> (i32, i32, i32) {
    %c0_i32 = arith.constant 0 : i32
    %c0_i32_0 = arith.constant 0 : i32
    %c0_i32_1 = arith.constant 0 : i32
    return %arg0, %c0_i32, %c0_i32_0 : i32, i32, i32
  }
  func.func @transform_8(%arg0: i32) -> (i32, i32, i32) {
    %c0_i32 = arith.constant 0 : i32
    %c0_i32_0 = arith.constant 0 : i32
    %c0_i32_1 = arith.constant 0 : i32
    return %arg0, %c0_i32, %c0_i32_0 : i32, i32, i32
  }
  func.func @transform_9(%arg0: i32) -> (i32, i32, i32) {
    %c0_i32 = arith.constant 0 : i32
    %c0_i32_0 = arith.constant 0 : i32
    %c0_i32_1 = arith.constant 0 : i32
    return %arg0, %c0_i32, %c0_i32_0 : i32, i32, i32
  }
  func.func @transform_10(%arg0: i32) -> (i32, i32, i32) {
    %c0_i32 = arith.constant 0 : i32
    %c0_i32_0 = arith.constant 0 : i32
    %c0_i32_1 = arith.constant 0 : i32
    return %arg0, %c0_i32, %c0_i32_0 : i32, i32, i32
  }
  func.func @transform_11(%arg0: i32) -> (i32, i32, i32) {
    %c0_i32 = arith.constant 0 : i32
    %c0_i32_0 = arith.constant 0 : i32
    %c0_i32_1 = arith.constant 0 : i32
    return %arg0, %c0_i32, %c0_i32_0 : i32, i32, i32
  }
  func.func @transform_12(%arg0: i32) -> (i32, i32, i32) {
    %c0_i32 = arith.constant 0 : i32
    %c0_i32_0 = arith.constant 0 : i32
    %c0_i32_1 = arith.constant 0 : i32
    return %arg0, %c0_i32, %c0_i32_0 : i32, i32, i32
  }
  func.func @transform_13(%arg0: i32) -> (i32, i32) {
    %c0_i32 = arith.constant 0 : i32
    %c0_i32_0 = arith.constant 0 : i32
    %c0_i32_1 = arith.constant 0 : i32
    return %c0_i32, %c0_i32_0 : i32, i32
  }
}

</mosaic_0001>

<bundles_post_ra>
// kernel: tpu_custom_call.1
= control target key start
LH: loop header
LB: loop body
LE: loop exit
PB: predicated region body
PF: predicated region fallthrough
CT: control target
= control target key end

     0   :  { %s3051_s0 = inlined_call_operand.vmem [shape: f32[16,32], index: 0, kind: input, shape index: {}]   ;;  %s3052_s1 = inlined_call_operand.vmem [shape: f32[2,1,32], index: 1, kind: input, shape index: {}]   ;;  %s3053_s2 = inlined_call_operand.vmem [shape: f32[2,1,32], index: 2, kind: input, shape index: {}]   ;;  %s3054_s3 = inlined_call_operand.vmem [shape: bf16[2,32,96], index: 3, kind: input, shape index: {}]   ;;  %s3055_s4 = inlined_call_operand.vmem [shape: f32[2,1,96], index: 4, kind: input, shape index: {}]   ;;  %s3056_s5 = inlined_call_operand.vmem [shape: bf16[2,32,32], index: 5, kind: input, shape index: {}]   ;;  %s3057_s6 = inlined_call_operand.vmem [shape: f32[2,1,32], index: 6, kind: input, shape index: {}]   ;;  %s3058_s7 = inlined_call_operand.vmem [shape: f32[2,1,32], index: 7, kind: input, shape index: {}]   ;;  %s3059_s8 = inlined_call_operand.vmem [shape: f32[2,1,32], index: 8, kind: input, shape index: {}]   ;;  %s3060_s9 = inlined_call_operand.vmem [shape: bf16[2,32,128], index: 9, kind: input, shape index: {}]   ;;  %s3061_s10 = inlined_call_operand.vmem [shape: f32[2,1,128], index: 10, kind: input, shape index: {}]   ;;  %s3062_s11 = inlined_call_operand.vmem [shape: bf16[2,128,32], index: 11, kind: input, shape index: {}]   ;;  %s3063_s12 = inlined_call_operand.vmem [shape: f32[2,1,32], index: 12, kind: input, shape index: {}]   ;;  %s3064_s13 = inlined_call_operand.hbm [shape: f32[16,32], index: 13, kind: output, shape index: {}]  }
   0x1   :  { %3068 = sst [smem:[#allocation9_spill]] %s3054_s3 }
   0x2   :  { %3069 = sst [smem:[#allocation10_spill]] %s3056_s5 }
   0x3   :  { %3070 = sst [smem:[#allocation11_spill]] %s3064_s13 }
   0x4   :  { %18 = vsyncpa [#allocation5], 0  ;;  %s2685_s25 = smov 0  }
   0x5 LB: > { %3071 = sst [smem:[#allocation7_spill]] %s2598_s25  ;;  %s2691_s26 = sadd.s32 4294967295, %s2598_s25   ;;  %s2598_s25 = sphi %s2685_s25, %s24_s25  }
   0x6   : > { %p2198_p0 = scmp.ge.s32.totalorder %s2598_s25, 1  ;;  %p477_p1 = scmp.lt.s32.totalorder %s2598_s25, 3 }
   0x8   : > { %p478_p2 = pnand %p2198_p0, %p477_p1 }
   0xa   : > { %481 = sbr.rel (%p478_p2) target bundleno = 2661 (0xa65), region = 72 }
  0x11   : > { %p555_p3 = scmp.lt.s32.totalorder %s2691_s26, 1  ;;  %s3072_s3 = sld [smem:[#allocation9_spill]] }
  0x12   : > { %s3073_s5 = sld [smem:[#allocation10_spill]]  ;;  %p2207_p4 = scmp.ne.s32.totalorder %s2691_s26, 0 }
  0x13   : > { %s2697_s27 = scalar_select %p555_p3, %s2691_s26, 1 }
  0x14   : > { %603 = sbr.rel (%p2207_p4) target bundleno = 27 (0x1b), region = 76  ;;  %v604_v0 = vld [vmem:[%s3051_s0] sm:$0xff] (!%p2207_p4)  ;;  %vm606_vm0 = vcmask (!%p2207_p4), 261120   ;;  %v605_v1 = vld [vmem:[%s3051_s0 + $0x8] sm:$0xff] (!%p2207_p4) }
  0x15   : > { %s2254_s17 = sshll.u32 %s2697_s27, 4  ;;  %s579_s13 = scalar_lea.vmem %s3058_s7, %s2697_s27  ;;  %607 = vst.msk [vmem:[#allocation2] sm:$0xff] (!%p2207_p4), %vm606_vm0, %v604_v0  ;;  %608 = vst.msk [vmem:[#allocation2 + $0x8] sm:$0xff] (!%p2207_p4), %vm606_vm0, %v605_v1 }
  0x16   : > { %s582_s20 = scalar_lea.vmem %s3059_s8, %s2697_s27  ;;  %s598_s18 = scalar_lea.vmem %s3063_s12, %s2697_s27 }
  0x17   : > { %s2715_s23 = scalar_lea.vmem %s3072_s3, %s2254_s17  ;;  %s2737_s3 = scalar_lea.vmem %s3060_s9, %s2254_s17 }
  0x18   : > { %s2720_s29 = scalar_lea.vmem %s3073_s5, %s2254_s17  ;;  %s590_s5 = scalar_lea.vmem %s3061_s10, %s2697_s27 }
  0x19   : > { %3074 = sst [smem:[#allocation8_spill]] %s2720_s29  ;;  %s2257_s29 = sshll.u32 %s2697_s27, 6 }
  0x1a   : > { %s2747_s14 = scalar_lea.vmem %s3062_s11, %s2257_s29 }
  0x1b PF: > { %vm613_vm1 = vcmask 261120   ;;  %v2504_v16 = vld [vmem:[%s2715_s23] sm:$0xff]   ;;  %v2600_v17 = vmov 0.0   ;;  %v2505_v18 = vld [vmem:[%s2715_s23 + $0x8] sm:$0xff]   ;;  %vm2601_vm2 = vmmov 0   ;;  %s3075_s24 = scalar_lea.vmem %s3052_s1, %s2697_s27  ;;  %s3076_s30 = scalar_lea.vmem %s3053_s2, %s2697_s27  ;;  %vm768_vm3 = vcmask 1043456  }
  0x1c   : > { %v2760_v2 = vld [vmem:[#allocation2] sm:$0xff]  ;;  %v2762_v3 = vld [vmem:[#allocation2 + $0x8] sm:$0xff]  ;;  %2308 = vmatprep.subr.bf16.mxu1 %v2600_v17  ;;  %2328 = vmatprep.subr.bf16.mxu0 %v2600_v17  ;;  %s3077_s19 = scalar_lea.vmem %s3055_s4, %s2697_s27  ;;  %s2602_s17 = smov 120   ;;  %vm764_vm4 = vcmask 64512   ;;  %vm988_vm5 = vcmask 130112   ;;  %vm1102_vm6 = vcmask 195712  }
  0x1d   : > { %v614_v4 = vsel %vm613_vm1, %v2760_v2, 0.0  ;;  %v617_v5 = vsel %vm613_vm1, %v2762_v3, 0.0  ;;  %2309 = vmatpush3.bf16.msra.mxu1 %v2504_v16  ;;  %2312 = vmatprep.mubr.msk.bf16.mxu1 %vm2601_vm2, %v2600_v17  ;;  %v2208_v27 = vld [vmem:[%s3075_s24] ss:$0 sm:$0xff]  ;;  %s2603_s21 = smov 96   ;;  %s2604_s22 = smov 112  }
  0x1e   : > { %615 = vadd.xlane.f32.xlu0 %v614_v4  ;;  %2310 = vmatprep.subr.bf16.mxu1 %v2600_v17  ;;  %v2209_v31 = vld [vmem:[%s3076_s30] ss:$0 sm:$0xff]  ;;  %s2605_s23 = smov 104   ;;  %s2606_s29 = smov 64   ;;  %vm1218_vm7 = vcmask 261312  }
  0x1f   : > { %2330 = vmatprep.mubr.msk.bf16.mxu0 %vm2601_vm2, %v2600_v17  ;;  %v2210_v36 = vld [vmem:[%s3077_s19] ss:$0 sm:$0xff]  ;;  %s2607_s24 = smov 48   ;;  %s2608_s28 = smov 56  }
  0x20   : > { %s2609_s25 = smov 40   ;;  %s2610_s30 = smov 8  }
  0x21   : > { %2311 = vmatpush3.bf16.msra.mxu1 %v2505_v18  ;;  %s2611_s16 = smov 16   ;;  %s3078_s15 = sld [smem:[#allocation8_spill]] }
  0x22   : > { %618 = vadd.xlane.f32.xlu0 %v617_v5  ;;  %2316 = vmatprep.subr.bf16.mxu1 %v2600_v17  ;;  %s2612_s19 = smov 24   ;;  %p2249_p5 = scmp.ne.s32.totalorder %s2691_s26, 1 }
  0xab   : > { %v616_v6 = vpop.xlane.xlu0 %615 }
  0xac   : > { %v621_v7 = vmul.f32 0.03125, %v616_v6 }
  0xae   : > { %v623_v8 = vsub.f32 %v2760_v2, %v621_v7 }
  0xaf   : > { %v619_v9 = vpop.xlane.xlu0 %618 }
  0xb0   : > { %v622_v10 = vmul.f32 0.03125, %v619_v9  ;;  %v625_v11 = vmul.f32 %v623_v8, %v623_v8 }
  0xb2   : > { %v624_v12 = vsub.f32 %v2762_v3, %v622_v10  ;;  %v627_v13 = vsel %vm613_vm1, %v625_v11, 0.0 }
  0xb3   : > { %628 = vadd.xlane.f32.xlu1 %v627_v13 }
  0xb4   : > { %v626_v14 = vmul.f32 %v624_v12, %v624_v12 }
  0xb6   : > { %v630_v15 = vsel %vm613_vm1, %v626_v14, 0.0 }
  0xb7   : > { %631 = vadd.xlane.f32.xlu1 %v630_v15 }
 0x140   : > { %v629_v19 = vpop.xlane.xlu1 %628 }
 0x141   : > { %v633_v20 = vmul.f32 0.03125, %v629_v19 }
 0x143   : > { %v635_v21 = vadd.f32 1e-05, %v633_v20 }
 0x144   : > { %v632_v22 = vpop.xlane.xlu1 %631 }
 0x145   : > { %2518 = vrsqrt.f32 %v635_v21  ;;  %v634_v23 = vmul.f32 0.03125, %v632_v22 }
 0x147   : > { %v636_v24 = vadd.f32 1e-05, %v634_v23 }
 0x149   : > { %2520 = vrsqrt.f32 %v636_v24 }
 0x14f   : > { %v2519_v25 = vpop.eup %2518 }
 0x150   : > { %v639_v26 = vmul.f32 %v2519_v25, %v623_v8 }
 0x152   : > { %v647_v30 = vmul.f32 %v2208_v27, %v639_v26 }
 0x153   : > { %v2521_v28 = vpop.eup %2520 }
 0x154   : > { %v640_v29 = vmul.f32 %v2521_v28, %v624_v12  ;;  %v655_v33 = vadd.f32 %v2209_v31, %v647_v30 }
 0x156   : > { %v648_v32 = vmul.f32 %v2208_v27, %v640_v29 }
 0x158   : > { %v656_v34 = vadd.f32 %v2209_v31, %v648_v32 }
 0x15a   : > { %v657_v35 = vpack.c.bf16 %v656_v34, %v655_v33 }
 0x15c   : > { %2313 = vmatmul.mubr.msk.bf16.vlgmr.msra.gmra.mrb[0].mxu1 %vm613_vm1, %v657_v35 }
 0x15d   : > { %2318 = vmatprep.mubr.msk.bf16.mxu1 %vm2601_vm2, %v2600_v17 }
 0x22f   : > { %v718_v37 = vpop.f32.mrb[0].mxu1 }
 0x230   : > { %v719_v38 = vadd.f32 %v2210_v36, %v718_v37  ;;  %v2314_v39 = vpop.f32.mrb[1].mxu1 }
 0x231   : > { %v721_v40 = vpop.f32.mrb[2].mxu1 }
 0x232   : > { %v2800_v41 = vpack.c.bf16 %v719_v38, %v719_v38  ;;  %v722_v42 = vadd.f32 %v2210_v36, %v721_v40  ;;  %v2315_v43 = vpop.f32.mrb[3].mxu1 }
 0x234   : > { %v2477_v44 = vpack.i.bf16 %v722_v42, %v719_v38  ;;  %874 = vrot.lane.b32.xlu1 %v2800_v41, %s2602_s17  ;;  %v2805_v45 = vpack.c.bf16 %v722_v42, %v722_v42 }
 0x236   : > { %2478 = vrot.lane.b32.xlu0 %v2477_v44, %s2603_s21 }
 0x23a   : > { %990 = vrot.lane.b32.xlu0 %v2800_v41, %s2604_s22 }
 0x23e   : > { %1104 = vrot.lane.b32.xlu0 %v2800_v41, %s2605_s23 }
 0x242   : > { %1367 = vrot.lane.b32.xlu0 %v2805_v45, %s2602_s17 }
 0x246   : > { %1482 = vrot.lane.b32.xlu0 %v2805_v45, %s2604_s22  ;;  %s3079_s22 = scalar_lea.vmem %s3057_s6, %s2697_s27 }
 0x24a   : > { %1595 = vrot.lane.b32.xlu0 %v2805_v45, %s2605_s23 }
 0x24e   : > { %823 = vrot.lane.b32.xlu0 %v2800_v41, %s2606_s29 }
 0x252   : > { %1048 = vrot.lane.b32.xlu0 %v2800_v41, %s2607_s24 }
 0x2a6   : > { %v875_v50 = vpop.permute.xlu1 %874 }
 0x2a8   : > { %v2479_v46 = vpop.permute.xlu0 %2478 }
 0x2a9   : > { %2483 = vxpose.xlu1.b32.start.end [1/1] (short) (narrow) %v2479_v46, 32 }
 0x2ac   : > { %v991_v47 = vpop.permute.xlu0 %990 }
 0x2b0   : > { %v1105_v48 = vpop.permute.xlu0 %1104 }
 0x2b4   : > { %v1368_v49 = vpop.permute.xlu0 %1367 }
 0x2b8   : > { %v1483_v51 = vpop.permute.xlu0 %1482 }
 0x2bc   : > { %v2816_v54 = vpop.permute.xlu0 %1595 }
 0x2c0   : > { %v824_v61 = vpop.permute.xlu0 %823 }
 0x2c1   : > { %v829_v4 = vsel %vm768_vm3, %v824_v61, 0 }
 0x2d3   : > { %934 = vrot.lane.b32.xlu1 %v2800_v41, %s2608_s28 }
 0x329   : > { %v2484_v52 = vpop.trf.xlu1 }
 0x32a   : > { %v2485_v55 = vunpack.i.l.bf16 %v2484_v52  ;;  %v2488_v10 = vunpack.i.h.bf16 %v2484_v52 }
 0x32d   : > { %v2489_v53 = vpop.trf.xlu1 }
 0x32e   : > { %v2490_v56 = vunpack.i.l.bf16 %v2489_v53  ;;  %v2493_v8 = vunpack.i.h.bf16 %v2489_v53 }
 0x330   : > { %v761_v57 = vpack.c.bf16 %v2490_v56, %v2485_v55  ;;  %v1256_v11 = vpack.c.bf16 %v2493_v8, %v2488_v10 }
 0x331   : > { %v2494_v58 = vpop.trf.xlu1 }
 0x332   : > { %v770_v59 = vsel %vm768_vm3, %v761_v57, 0  ;;  %v877_v60 = vrot.slane %v761_v57, 4  ;;  %v2495_v0 = vunpack.i.l.bf16 %v2494_v58  ;;  %v1263_v12 = vsel %vm768_vm3, %v1256_v11, 0 }
 0x333   : > { %2317 = vmatpush3.bf16.msra.mxu1 %v770_v59  ;;  %v1370_v13 = vrot.slane %v1256_v11, 4  ;;  %v2498_v16 = vunpack.i.h.bf16 %v2494_v58 }
 0x334   : > { %v882_v63 = vsel %vm768_vm3, %v877_v60, 0  ;;  %2322 = vmatprep.subr.bf16.mxu1 %v2600_v17 }
 0x335   : > { %v2499_v62 = vpop.trf.xlu1  ;;  %2329 = vmatpush3.bf16.msra.mxu0 %v882_v63  ;;  %v1375_v15 = vsel %vm768_vm3, %v1370_v13, 0 }
 0x336   : > { %v2500_v1 = vunpack.i.l.bf16 %v2499_v62  ;;  %2319 = vmatmul.mubr.msk.bf16.vlgmr.msra.gmra.mrb[4].mxu1 %vm764_vm4, %v2800_v41  ;;  %2340 = vmatprep.subr.bf16.mxu0 %v2600_v17  ;;  %v2503_v14 = vunpack.i.h.bf16 %v2499_v62 }
 0x337   : > { %2323 = vmatpush3.bf16.msra.mxu1 %v829_v4  ;;  %2324 = vmatprep.mubr.msk.bf16.mxu1 %vm2601_vm2, %v2600_v17 }
 0x338   : > { %v762_v5 = vpack.c.bf16 %v2500_v1, %v2495_v0  ;;  %2331 = vmatmul.mubr.msk.bf16.vlgmr.msra.gmra.mrb[0].mxu0 %vm764_vm4, %v875_v50  ;;  %2334 = vmatprep.subr.bf16.mxu1 %v2600_v17  ;;  %v1257_v18 = vpack.c.bf16 %v2503_v14, %v2498_v16  ;;  %v1049_v0 = vpop.permute.xlu0 %1048 }
 0x339   : > { %2342 = vmatprep.mubr.msk.bf16.mxu0 %vm2601_vm2, %v2600_v17 }
 0x33a   : > { %v996_v6 = vsel %vm768_vm3, %v762_v5, 0  ;;  %v1107_v7 = vrot.slane %v762_v5, 4  ;;  %v1488_v19 = vsel %vm768_vm3, %v1257_v18, 0  ;;  %v1598_v20 = vrot.slane %v1257_v18, 4 }
 0x33b   : > { %2341 = vmatpush3.bf16.msra.mxu0 %v996_v6 }
 0x33c   : > { %2352 = vmatprep.subr.bf16.mxu0 %v2600_v17  ;;  %v1112_v9 = vsel %vm768_vm3, %v1107_v7, 0  ;;  %v1603_v21 = vsel %vm768_vm3, %v1598_v20, 0 }
 0x340   : > { %2343 = vmatmul.mubr.msk.bf16.vlgmr.msra.gmra.mrb[4].mxu0 %vm764_vm4, %v991_v47 }
 0x341   : > { %2353 = vmatpush3.bf16.msra.mxu0 %v1112_v9  ;;  %2354 = vmatprep.mubr.msk.bf16.mxu0 %vm2601_vm2, %v2600_v17 }
 0x342   : > { %2364 = vmatprep.subr.bf16.mxu0 %v2600_v17 }
 0x345   : > { %v935_v1 = vpop.permute.xlu1 %934 }
 0x346   : > { %v940_v14 = vsel %vm768_vm3, %v935_v1, 0 }
 0x348   : > { %2355 = vmatmul.mubr.msk.bf16.vlgmr.msra.gmra.mrb[8].mxu0 %vm764_vm4, %v1105_v48 }
 0x349   : > { %2365 = vmatpush3.bf16.msra.mxu0 %v1263_v12  ;;  %2366 = vmatprep.mubr.msk.bf16.mxu0 %vm2601_vm2, %v2600_v17 }
 0x34a   : > { %2376 = vmatprep.subr.bf16.mxu0 %v2600_v17 }
 0x350   : > { %2367 = vmatmul.mubr.msk.bf16.vlgmr.msra.gmra.mrb[12].mxu0 %vm764_vm4, %v2805_v45 }
 0x351   : > { %2377 = vmatpush3.bf16.msra.mxu0 %v1375_v15  ;;  %2378 = vmatprep.mubr.msk.bf16.mxu0 %vm2601_vm2, %v2600_v17 }
 0x352   : > { %2388 = vmatprep.subr.bf16.mxu0 %v2600_v17 }
 0x358   : > { %2379 = vmatmul.mubr.msk.bf16.vlgmr.msra.gmra.mrb[16].mxu0 %vm764_vm4, %v1368_v49 }
 0x359   : > { %2389 = vmatpush3.bf16.msra.mxu0 %v1488_v19  ;;  %2390 = vmatprep.mubr.msk.bf16.mxu0 %vm2601_vm2, %v2600_v17 }
 0x35a   : > { %2400 = vmatprep.subr.bf16.mxu0 %v2600_v17 }
 0x360   : > { %2391 = vmatmul.mubr.msk.bf16.vlgmr.msra.gmra.mrb[20].mxu0 %vm764_vm4, %v1483_v51 }
 0x361   : > { %2401 = vmatpush3.bf16.msra.mxu0 %v1603_v21  ;;  %2402 = vmatprep.mubr.msk.bf16.mxu0 %vm2601_vm2, %v2600_v17 }
 0x362   : > { %2412 = vmatprep.subr.bf16.mxu0 %v2600_v17 }
 0x368   : > { %2403 = vmatmul.mubr.msk.bf16.vlgmr.msra.gmra.mrb[24].mxu0 %vm764_vm4, %v2816_v54 }
 0x369   : > { %2416 = vmatprep.mubr.msk.bf16.mxu0 %vm2601_vm2, %v2600_v17 }
 0x409   : > { %v806_v22 = vpop.f32.mrb[4].mxu1 }
 0x40a   : > { %v2320_v23 = vpop.f32.mrb[5].mxu1  ;;  %v812_v24 = vsel %vm764_vm4, %v806_v22, -inf }
 0x40b   : > { %v918_v25 = vpop.f32.mrb[0].mxu0  ;;  %813 = vmax.xlane.f32.xlu0 %v812_v24  ;;  %v809_v26 = vpop.f32.mrb[6].mxu1 }
 0x40c   : > { %v2321_v27 = vpop.f32.mrb[7].mxu1  ;;  %v2332_v28 = vpop.f32.mrb[1].mxu0  ;;  %v924_v29 = vsel %vm764_vm4, %v918_v25, -inf }
 0x40d   : > { %925 = vmax.xlane.f32.xlu1 %v924_v29  ;;  %v921_v30 = vpop.f32.mrb[2].mxu0 }
 0x40e   : > { %v2333_v31 = vpop.f32.mrb[3].mxu0 }
 0x413   : > { %v1032_v32 = vpop.f32.mrb[4].mxu0 }
 0x414   : > { %v2344_v33 = vpop.f32.mrb[5].mxu0  ;;  %v1038_v34 = vsel %vm764_vm4, %v1032_v32, -inf }
 0x415   : > { %v1035_v35 = vpop.f32.mrb[6].mxu0  ;;  %1039 = vmax.xlane.f32.xlu0 %v1038_v34 }
 0x416   : > { %v2345_v36 = vpop.f32.mrb[7].mxu0 }
 0x41b   : > { %v1148_v37 = vpop.f32.mrb[8].mxu0 }
 0x41c   : > { %v2356_v38 = vpop.f32.mrb[9].mxu0  ;;  %v1154_v39 = vsel %vm764_vm4, %v1148_v37, -inf }
 0x41d   : > { %v1151_v40 = vpop.f32.mrb[10].mxu0  ;;  %1155 = vmax.xlane.f32.xlu0 %v1154_v39 }
 0x41e   : > { %v2357_v42 = vpop.f32.mrb[11].mxu0 }
 0x423   : > { %v2867_v43 = vpop.f32.mrb[12].mxu0 }
 0x424   : > { %v2368_v44 = vpop.f32.mrb[13].mxu0  ;;  %v1305_v46 = vsel %vm764_vm4, %v2867_v43, -inf }
 0x425   : > { %v1302_v47 = vpop.f32.mrb[14].mxu0  ;;  %1306 = vmax.xlane.f32.xlu0 %v1305_v46 }
 0x426   : > { %v2369_v48 = vpop.f32.mrb[15].mxu0 }
 0x42b   : > { %v2871_v49 = vpop.f32.mrb[16].mxu0 }
 0x42c   : > { %v2380_v50 = vpop.f32.mrb[17].mxu0  ;;  %v1417_v51 = vsel %vm764_vm4, %v2871_v49, -inf }
 0x42d   : > { %1418 = vmax.xlane.f32.xlu1 %v1417_v51  ;;  %v1414_v52 = vpop.f32.mrb[18].mxu0 }
 0x42e   : > { %v2381_v53 = vpop.f32.mrb[19].mxu0 }
 0x433   : > { %v2875_v54 = vpop.f32.mrb[20].mxu0 }
 0x434   : > { %v2392_v55 = vpop.f32.mrb[21].mxu0  ;;  %v1530_v62 = vsel %vm764_vm4, %v2875_v54, -inf }
 0x435   : > { %v1527_v56 = vpop.f32.mrb[22].mxu0 }
 0x436   : > { %v2393_v57 = vpop.f32.mrb[23].mxu0 }
 0x43b   : > { %v2877_v58 = vpop.f32.mrb[24].mxu0  ;;  %1316 = vrot.lane.b32.xlu0 %v2805_v45, %s2606_s29 }
 0x43c   : > { %v2404_v59 = vpop.f32.mrb[25].mxu0  ;;  %v1645_v63 = vsel %vm764_vm4, %v2877_v58, -inf }
 0x43d   : > { %v1642_v60 = vpop.f32.mrb[26].mxu0 }
 0x43e   : > { %1164 = vrot.lane.b32.xlu1 %v2800_v41, %s2609_s25  ;;  %v2405_v61 = vpop.f32.mrb[27].mxu0 }
 0x43f   : > { %1427 = vrot.lane.b32.xlu0 %v2805_v45, %s2608_s28 }
 0x45e   : > { %1531 = vmax.xlane.f32.xlu0 %v1530_v62 }
 0x462   : > { %1646 = vmax.xlane.f32.xlu1 %v1645_v63 }
 0x473   : > { %1655 = vrot.lane.b32.xlu1 %v2805_v45, %s2609_s25 }
 0x474   : > { %1540 = vrot.lane.b32.xlu0 %v2805_v45, %s2607_s24 }
 0x498   : > { %v814_v41 = vpop.xlane.xlu0 %813 }
 0x499   : > { %v815_v4 = vsub.f32 %v806_v22, %v814_v41  ;;  %v1054_v22 = vsel %vm768_vm3, %v1049_v0, 0 }
 0x49a   : > { %v926_v5 = vpop.xlane.xlu1 %925 }
 0x49b   : > { %v816_v6 = vmul.f32 1.442695, %v815_v4  ;;  %v927_v7 = vsub.f32 %v918_v25, %v926_v5 }
 0x49d   : > { %2522 = vpow2.f32 %v816_v6  ;;  %v928_v8 = vmul.f32 1.442695, %v927_v7 }
 0x49f   : > { %2524 = vpow2.f32 %v928_v8 }
 0x4a2   : > { %v1040_v9 = vpop.xlane.xlu0 %1039 }
 0x4a3   : > { %v1041_v10 = vsub.f32 %v1032_v32, %v1040_v9 }
 0x4a5   : > { %v1042_v11 = vmul.f32 1.442695, %v1041_v10 }
 0x4a7   : > { %v2891_v12 = vpop.eup %2522  ;;  %2526 = vpow2.f32 %v1042_v11 }
 0x4a8   : > { %v821_v13 = vpack.c.bf16 %v2891_v12, %v2891_v12  ;;  %v818_v62 = vsel %vm764_vm4, %v2891_v12, 0.0 }
 0x4a9   : > { %v2525_v45 = vpop.eup %2524 }
 0x4aa   : > { %2325 = vmatmul.mubr.msk.bf16.vlgmr.msra.gmra.mrb[8].mxu1 %vm764_vm4, %v821_v13  ;;  %v1156_v15 = vpop.xlane.xlu0 %1155  ;;  %v930_v16 = vsel %vm764_vm4, %v2525_v45, 0.0  ;;  %v933_v20 = vpack.c.bf16 %v2525_v45, %v2525_v45 }
 0x4ab   : > { %2335 = vmatpush3.bf16.msra.mxu1 %v940_v14  ;;  %v1157_v18 = vsub.f32 %v1148_v37, %v1156_v15  ;;  %931 = vadd.xlane.f32.xlu0 %v930_v16 }
 0x4ac   : > { %2336 = vmatprep.mubr.msk.bf16.mxu1 %vm2601_vm2, %v2600_v17  ;;  %2346 = vmatprep.subr.bf16.mxu1 %v2600_v17 }
 0x4ad   : > { %v1158_v19 = vmul.f32 1.442695, %v1157_v18 }
 0x4af   : > { %2528 = vpow2.f32 %v1158_v19 }
 0x4b1   : > { %v2527_v21 = vpop.eup %2526 }
 0x4b2   : > { %2337 = vmatmul.mubr.msk.bf16.vlgmr.msra.gmra.mrb[12].mxu1 %vm764_vm4, %v933_v20  ;;  %v1307_v23 = vpop.xlane.xlu0 %1306  ;;  %v1044_v24 = vsel %vm764_vm4, %v2527_v21, 0.0  ;;  %v1047_v27 = vpack.c.bf16 %v2527_v21, %v2527_v21 }
 0x4b3   : > { %2347 = vmatpush3.bf16.msra.mxu1 %v1054_v22  ;;  %1045 = vadd.xlane.f32.xlu0 %v1044_v24  ;;  %v1308_v25 = vsub.f32 %v2867_v43, %v1307_v23 }
 0x4b4   : > { %2348 = vmatprep.mubr.msk.bf16.mxu1 %vm2601_vm2, %v2600_v17  ;;  %2358 = vmatprep.subr.bf16.mxu1 %v2600_v17 }
 0x4b5   : > { %v1309_v26 = vmul.f32 1.442695, %v1308_v25 }
 0x4b6   : > { %v1317_v35 = vpop.permute.xlu0 %1316 }
 0x4b7   : > { %2530 = vpow2.f32 %v1309_v26  ;;  %v1322_v37 = vsel %vm768_vm3, %v1317_v35, 0 }
 0x4b9   : > { %v2529_v28 = vpop.eup %2528 }
 0x4ba   : > { %v1419_v29 = vpop.xlane.xlu1 %1418  ;;  %2349 = vmatmul.mubr.msk.bf16.vlgmr.msra.gmra.mrb[16].mxu1 %vm764_vm4, %v1047_v27  ;;  %v1160_v30 = vsel %vm764_vm4, %v2529_v28, 0.0  ;;  %v1163_v36 = vpack.c.bf16 %v2529_v28, %v2529_v28  ;;  %v1428_v39 = vpop.permute.xlu0 %1427 }
 0x4bb   : > { %v1420_v31 = vsub.f32 %v2871_v49, %v1419_v29  ;;  %1161 = vadd.xlane.f32.xlu0 %v1160_v30  ;;  %2360 = vmatprep.mubr.msk.bf16.mxu1 %vm2601_vm2, %v2600_v17  ;;  %v1433_v44 = vsel %vm768_vm3, %v1428_v39, 0 }
 0x4bd   : > { %v1421_v32 = vmul.f32 1.442695, %v1420_v31 }
 0x4be   : > { %v1165_v33 = vpop.permute.xlu1 %1164 }
 0x4bf   : > { %2532 = vpow2.f32 %v1421_v32  ;;  %v1170_v34 = vsel %vm768_vm3, %v1165_v33, 0 }
 0x4c0   : > { %2359 = vmatpush3.bf16.msra.mxu1 %v1170_v34 }
 0x4c1   : > { %2370 = vmatprep.subr.bf16.mxu1 %v2600_v17  ;;  %v2531_v38 = vpop.eup %2530 }
 0x4c2   : > { %v1314_v42 = vpack.c.bf16 %v2531_v38, %v2531_v38  ;;  %v1311_v0 = vsel %vm764_vm4, %v2531_v38, 0.0 }
 0x4c3   : > { %2361 = vmatmul.mubr.msk.bf16.vlgmr.msra.gmra.mrb[20].mxu1 %vm764_vm4, %v1163_v36 }
 0x4c4   : > { %2371 = vmatpush3.bf16.msra.mxu1 %v1322_v37  ;;  %2372 = vmatprep.mubr.msk.bf16.mxu1 %vm2601_vm2, %v2600_v17 }
 0x4c5   : > { %2382 = vmatprep.subr.bf16.mxu1 %v2600_v17 }
 0x4c9   : > { %v2533_v40 = vpop.eup %2532 }
 0x4ca   : > { %v1423_v43 = vsel %vm764_vm4, %v2533_v40, 0.0  ;;  %v1426_v46 = vpack.c.bf16 %v2533_v40, %v2533_v40 }
 0x4cb   : > { %1424 = vadd.xlane.f32.xlu1 %v1423_v43  ;;  %2373 = vmatmul.mubr.msk.bf16.vlgmr.msra.gmra.mrb[24].mxu1 %vm764_vm4, %v1314_v42 }
 0x4cc   : > { %2383 = vmatpush3.bf16.msra.mxu1 %v1433_v44  ;;  %2384 = vmatprep.mubr.msk.bf16.mxu1 %vm2601_vm2, %v2600_v17 }
 0x4cd   : > { %2394 = vmatprep.subr.bf16.mxu1 %v2600_v17 }
 0x4d3   : > { %2385 = vmatmul.mubr.msk.bf16.vlgmr.msra.gmra.mrb[28].mxu1 %vm764_vm4, %v1426_v46 }
 0x4d4   : > { %2396 = vmatprep.mubr.msk.bf16.mxu1 %vm2601_vm2, %v2600_v17 }
 0x4eb   : > { %v1532_v47 = vpop.xlane.xlu0 %1531 }
 0x4ec   : > { %v1533_v48 = vsub.f32 %v2875_v54, %v1532_v47 }
 0x4ee   : > { %v1534_v49 = vmul.f32 1.442695, %v1533_v48  ;;  %v2506_v48 = vld [vmem:[%s3078_s15] sm:$0xff]  }
 0x4ef   : > { %v1647_v50 = vpop.xlane.xlu1 %1646  ;;  %v1541_v51 = vpop.permute.xlu0 %1540  ;;  %2413 = vmatpush3.bf16.msra.mxu0 %v2506_v48  ;;  %v2510_v48 = vld [vmem:[%s2747_s14] sm:$0xff]  }
 0x4f0   : > { %2534 = vpow2.f32 %v1534_v49  ;;  %v1648_v52 = vsub.f32 %v2877_v58, %v1647_v50  ;;  %v1546_v53 = vsel %vm768_vm3, %v1541_v51, 0  ;;  %v2507_v51 = vld [vmem:[%s3078_s15 + $0x8] sm:$0xff]   ;;  %2414 = vmatprep.subr.bf16.mxu0 %v2600_v17 }
 0x4f1   : > { %2395 = vmatpush3.bf16.msra.mxu1 %v1546_v53 }
 0x4f2   : > { %v1649_v55 = vmul.f32 1.442695, %v1648_v52  ;;  %2406 = vmatprep.subr.bf16.mxu1 %v2600_v17 }
 0x4f3   : > { %v1656_v57 = vpop.permute.xlu1 %1655  ;;  %2415 = vmatpush3.bf16.msra.mxu0 %v2507_v51  ;;  %v2513_v51 = vld [vmem:[%s2747_s14 + $0x18] sm:$0xff]  }
 0x4f4   : > { %2536 = vpow2.f32 %v1649_v55  ;;  %v1661_v54 = vsel %vm768_vm3, %v1656_v57, 0  ;;  %2428 = vmatprep.subr.bf16.mxu0 %v2600_v17 }
 0x4fa   : > { %v2535_v56 = vpop.eup %2534 }
 0x4fb   : > { %v1536_v59 = vsel %vm764_vm4, %v2535_v56, 0.0  ;;  %v1539_v60 = vpack.c.bf16 %v2535_v56, %v2535_v56 }
 0x4fc   : > { %1537 = vadd.xlane.f32.xlu0 %v1536_v59 }
 0x4fd   : > { %2397 = vmatmul.mubr.msk.bf16.vlgmr.msra.gmra.mrb[32].mxu1 %vm764_vm4, %v1539_v60 }
 0x4fe   : > { %v2537_v61 = vpop.eup %2536  ;;  %2407 = vmatpush3.bf16.msra.mxu1 %v1661_v54  ;;  %2408 = vmatprep.mubr.msk.bf16.mxu1 %vm2601_vm2, %v2600_v17 }
 0x4ff   : > { %v1651_v58 = vsel %vm764_vm4, %v2537_v61, 0.0  ;;  %2420 = vmatprep.subr.bf16.mxu1 %v2600_v17  ;;  %v1654_v63 = vpack.c.bf16 %v2537_v61, %v2537_v61 }
 0x500   : > { %1652 = vadd.xlane.f32.xlu0 %v1651_v58 }
 0x504   : > { %819 = vadd.xlane.f32.xlu0 %v818_v62 }
 0x505   : > { %2409 = vmatmul.mubr.msk.bf16.vlgmr.msra.gmra.mrb[36].mxu1 %vm764_vm4, %v1654_v63 }
 0x506   : > { %2424 = vmatprep.mubr.msk.bf16.mxu1 %vm2601_vm2, %v2600_v17 }
 0x508   : > { %1312 = vadd.xlane.f32.xlu0 %v1311_v0 }
 0x538   : > { %v932_v1 = vpop.xlane.xlu0 %931 }
 0x539   : > { %2538 = vrcp.f32 %v932_v1 }
 0x540   : > { %v1046_v6 = vpop.xlane.xlu0 %1045 }
 0x541   : > { %2540 = vrcp.f32 %v1046_v6 }
 0x543   : > { %v2539_v8 = vpop.eup %2538 }
 0x548   : > { %v1162_v9 = vpop.xlane.xlu0 %1161 }
 0x549   : > { %2542 = vrcp.f32 %v1162_v9 }
 0x54b   : > { %v2541_v15 = vpop.eup %2540 }
 0x553   : > { %v2543_v25 = vpop.eup %2542 }
 0x558   : > { %v1425_v30 = vpop.xlane.xlu1 %1424 }
 0x57d   : > { %v865_v41 = vpop.f32.mrb[8].mxu1 }
 0x57e   : > { %v2326_v4 = vpop.f32.mrb[9].mxu1 }
 0x57f   : > { %v868_v5 = vpop.f32.mrb[10].mxu1 }
 0x580   : > { %v2327_v7 = vpop.f32.mrb[11].mxu1 }
 0x585   : > { %v976_v10 = vpop.f32.mrb[12].mxu1 }
 0x586   : > { %v983_v11 = vmul.f32 %v2539_v8, %v976_v10  ;;  %v2338_v12 = vpop.f32.mrb[13].mxu1  ;;  %v2230_v8 = vld [vmem:[%s3079_s22] ss:$0 sm:$0xff] }
 0x587   : > { %v979_v13 = vpop.f32.mrb[14].mxu1 }
 0x588   : > { %985 = vrot.lane.b32.xlu1 %v983_v11, %s2610_s30  ;;  %v2339_v45 = vpop.f32.mrb[15].mxu1 }
 0x589   : > { %v1538_v14 = vpop.xlane.xlu0 %1537 }
 0x58d   : > { %v1653_v16 = vpop.xlane.xlu0 %1652  ;;  %v1090_v18 = vpop.f32.mrb[16].mxu1 }
 0x58e   : > { %v1097_v19 = vmul.f32 %v2541_v15, %v1090_v18  ;;  %v2350_v20 = vpop.f32.mrb[17].mxu1 }
 0x58f   : > { %v1093_v21 = vpop.f32.mrb[18].mxu1 }
 0x590   : > { %1099 = vrot.lane.b32.xlu1 %v1097_v19, %s2611_s16  ;;  %v2351_v22 = vpop.f32.mrb[19].mxu1 }
 0x591   : > { %v820_v23 = vpop.xlane.xlu0 %819 }
 0x592   : > { %2544 = vrcp.f32 %v820_v23 }
 0x595   : > { %v1313_v24 = vpop.xlane.xlu0 %1312 }
 0x596   : > { %2546 = vrcp.f32 %v1313_v24  ;;  %v1206_v26 = vpop.f32.mrb[20].mxu1 }
 0x597   : > { %v1213_v27 = vmul.f32 %v2543_v25, %v1206_v26  ;;  %v2362_v28 = vpop.f32.mrb[21].mxu1  ;;  %2548 = vrcp.f32 %v1425_v30 }
 0x598   : > { %v1209_v29 = vpop.f32.mrb[22].mxu1  ;;  %2550 = vrcp.f32 %v1538_v14  ;;  %v2509_v28 = vld [vmem:[%s2737_s3 + $0x8] sm:$0xff]  }
 0x599   : > { %v2363_v31 = vpop.f32.mrb[23].mxu1  ;;  %2552 = vrcp.f32 %v1653_v16 }
 0x59c   : > { %v2545_v32 = vpop.eup %2544 }
 0x59d   : > { %v872_v33 = vmul.f32 %v2545_v32, %v865_v41 }
 0x59e   : > { %v1358_v34 = vpop.f32.mrb[24].mxu1 }
 0x59f   : > { %v2374_v35 = vpop.f32.mrb[25].mxu1  ;;  %873 = vst.msk [vmem:[#allocation3] sm:$0xff] %vm764_vm4, %v872_v33 }
 0x5a0   : > { %v2547_v36 = vpop.eup %2546  ;;  %v1361_v37 = vpop.f32.mrb[26].mxu1 }
 0x5a1   : > { %v1365_v38 = vmul.f32 %v2547_v36, %v1358_v34  ;;  %v2375_v39 = vpop.f32.mrb[27].mxu1  ;;  %v2549_v40 = vpop.eup %2548  ;;  %v2234_v37 = vld [vmem:[%s579_s13] ss:$0 sm:$0xff] }
 0x5a2   : > { %v2551_v49 = vpop.eup %2550 }
 0x5a3   : > { %1366 = vst.msk [vmem:[#allocation3 + $0x8] sm:$0xff] %vm764_vm4, %v1365_v38  ;;  %v2553_v57 = vpop.eup %2552 }
 0x5a6   : > { %v1469_v42 = vpop.f32.mrb[28].mxu1 }
 0x5a7   : > { %v1476_v43 = vmul.f32 %v2549_v40, %v1469_v42  ;;  %v2386_v44 = vpop.f32.mrb[29].mxu1  ;;  %v2235_v42 = vld [vmem:[%s582_s20] ss:$0 sm:$0xff] }
 0x5a8   : > { %v1472_v46 = vpop.f32.mrb[30].mxu1 }
 0x5a9   : > { %1478 = vrot.lane.b32.xlu0 %v1476_v43, %s2610_s30  ;;  %v2387_v47 = vpop.f32.mrb[31].mxu1 }
 0x5d0   : > { %v1582_v50 = vpop.f32.mrb[32].mxu1 }
 0x5d1   : > { %v1589_v52 = vmul.f32 %v2551_v49, %v1582_v50  ;;  %v2398_v53 = vpop.f32.mrb[33].mxu1  ;;  %v2511_v49 = vld [vmem:[%s2747_s14 + $0x8] sm:$0xff]   ;;  %v2512_v50 = vld [vmem:[%s2747_s14 + $0x10] sm:$0xff]  }
 0x5d2   : > { %v1585_v55 = vpop.f32.mrb[34].mxu1  ;;  %v2515_v53 = vld [vmem:[%s2747_s14 + $0x28] sm:$0xff]  }
 0x5d3   : > { %1591 = vrot.lane.b32.xlu1 %v1589_v52, %s2611_s16  ;;  %v2399_v56 = vpop.f32.mrb[35].mxu1  ;;  %v2514_v52 = vld [vmem:[%s2747_s14 + $0x20] sm:$0xff]   ;;  %v2516_v55 = vld [vmem:[%s2747_s14 + $0x30] sm:$0xff]  }
 0x5d4   : > { %v2517_v56 = vld [vmem:[%s2747_s14 + $0x38] sm:$0xff]  }
 0x5d7   : > { %1215 = vrot.lane.b32.xlu1 %v1213_v27, %s2612_s19  ;;  %v2508_v27 = vld [vmem:[%s2737_s3] sm:$0xff]  }
 0x5d8   : > { %v1697_v59 = vpop.f32.mrb[36].mxu1  ;;  %2421 = vmatpush3.bf16.msra.mxu1 %v2508_v27 }
 0x5d9   : > { %v1704_v60 = vmul.f32 %v2553_v57, %v1697_v59  ;;  %v2410_v54 = vpop.f32.mrb[37].mxu1  ;;  %2422 = vmatprep.subr.bf16.mxu1 %v2600_v17  ;;  %v2236_v57 = vld [vmem:[%s590_s5] ss:$0 sm:$0xff] }
 0x5da   : > { %v1700_v61 = vpop.f32.mrb[38].mxu1 }
 0x5db   : > { %1706 = vrot.lane.b32.xlu0 %v1704_v60, %s2612_s19  ;;  %v2411_v58 = vpop.f32.mrb[39].mxu1 }
 0x5dc   : > { %2423 = vmatpush3.bf16.msra.mxu1 %v2509_v28 }
 0x5fa   : > { %v986_v62 = vpop.permute.xlu1 %985 }
 0x5fb   : > { %989 = vst.msk [vmem:[#allocation3] sm:$0xff] %vm988_vm5, %v986_v62 }
 0x602   : > { %v1100_v63 = vpop.permute.xlu1 %1099 }
 0x603   : > { %1103 = vst.msk [vmem:[#allocation3] sm:$0xff] %vm1102_vm6, %v1100_v63 }
 0x61b   : > { %v1479_v0 = vpop.permute.xlu0 %1478 }
 0x61c   : > { %1481 = vst.msk [vmem:[#allocation3 + $0x8] sm:$0xff] %vm988_vm5, %v1479_v0 }
 0x645   : > { %v1592_v1 = vpop.permute.xlu1 %1591 }
 0x646   : > { %1594 = vst.msk [vmem:[#allocation3 + $0x8] sm:$0xff] %vm1102_vm6, %v1592_v1 }
 0x649   : > { %v1216_v41 = vpop.permute.xlu1 %1215 }
 0x64a   : > { %1219 = vst.msk [vmem:[#allocation3] sm:$0xff] %vm1218_vm7, %v1216_v41 }
 0x64d   : > { %v1707_v4 = vpop.permute.xlu0 %1706 }
 0x64e   : > { %1709 = vst.msk [vmem:[#allocation3 + $0x8] sm:$0xff] %vm1218_vm7, %v1707_v4 }
 0x651   : > { %v1710_v5 = vld [vmem:[#allocation3] sm:$0xff] }
 0x655   : > { %v1711_v6 = vld [vmem:[#allocation3 + $0x8] sm:$0xff] }
 0x656   : > { %v1712_v7 = vpack.c.bf16 %v1711_v6, %v1710_v5 }
 0x658   : > { %2417 = vmatmul.mubr.msk.bf16.vlgmr.msra.gmra.mrb[28].mxu0 %vm613_vm1, %v1712_v7 }
 0x659   : > { %2444 = vmatprep.mubr.msk.bf16.mxu0 %vm2601_vm2, %v2600_v17  ;;  %2429 = vmatpush3.bf16.msra.mxu0 %v2510_v48 }
 0x65a   : > { %2430 = vmatprep.subr.bf16.mxu0 %v2600_v17 }
 0x65d   : > { %2431 = vmatpush3.bf16.msra.mxu0 %v2511_v49 }
 0x65e   : > { %2432 = vmatprep.subr.bf16.mxu0 %v2600_v17 }
 0x661   : > { %2433 = vmatpush3.bf16.msra.mxu0 %v2512_v50 }
 0x662   : > { %2434 = vmatprep.subr.bf16.mxu0 %v2600_v17 }
 0x665   : > { %2435 = vmatpush3.bf16.msra.mxu0 %v2513_v51 }
 0x666   : > { %2436 = vmatprep.subr.bf16.mxu0 %v2600_v17 }
 0x669   : > { %2437 = vmatpush3.bf16.msra.mxu0 %v2514_v52 }
 0x66a   : > { %2438 = vmatprep.subr.bf16.mxu0 %v2600_v17 }
 0x66d   : > { %2439 = vmatpush3.bf16.msra.mxu0 %v2515_v53 }
 0x66e   : > { %2440 = vmatprep.subr.bf16.mxu0 %v2600_v17 }
 0x671   : > { %2441 = vmatpush3.bf16.msra.mxu0 %v2516_v55 }
 0x672   : > { %2442 = vmatprep.subr.bf16.mxu0 %v2600_v17 }
 0x675   : > { %2443 = vmatpush3.bf16.msra.mxu0 %v2517_v56 }
 0x72b   : > { %v1773_v9 = vpop.f32.mrb[28].mxu0 }
 0x72c   : > { %v1774_v10 = vadd.f32 %v2230_v8, %v1773_v9  ;;  %v2418_v11 = vpop.f32.mrb[29].mxu0 }
 0x72d   : > { %v1776_v12 = vpop.f32.mrb[30].mxu0 }
 0x72e   : > { %v2965_v13 = vadd.f32 %v1774_v10, %v2760_v2  ;;  %v1777_v45 = vadd.f32 %v2230_v8, %v1776_v12  ;;  %v2419_v14 = vpop.f32.mrb[31].mxu0 }
 0x730   : > { %v2968_v15 = vadd.f32 %v1777_v45, %v2762_v3  ;;  %v1784_v16 = vsel %vm613_vm1, %v2965_v13, 0.0 }
 0x731   : > { %1785 = vadd.xlane.f32.xlu1 %v1784_v16 }
 0x732   : > { %v1787_v18 = vsel %vm613_vm1, %v2968_v15, 0.0 }
 0x733   : > { %1788 = vadd.xlane.f32.xlu0 %v1787_v18 }
 0x7be   : > { %v1786_v19 = vpop.xlane.xlu1 %1785 }
 0x7bf   : > { %v1790_v20 = vmul.f32 0.03125, %v1786_v19 }
 0x7c0   : > { %v1789_v21 = vpop.xlane.xlu0 %1788 }
 0x7c1   : > { %v1792_v2 = vsub.f32 %v2965_v13, %v1790_v20  ;;  %v1791_v22 = vmul.f32 0.03125, %v1789_v21  ;;  %v2248_v21 = vld [vmem:[%s598_s18] ss:$0 sm:$0xff] }
 0x7c3   : > { %v1793_v23 = vsub.f32 %v2968_v15, %v1791_v22  ;;  %v1794_v3 = vmul.f32 %v1792_v2, %v1792_v2 }
 0x7c5   : > { %v1796_v24 = vsel %vm613_vm1, %v1794_v3, 0.0  ;;  %v1795_v25 = vmul.f32 %v1793_v23, %v1793_v23 }
 0x7c6   : > { %1797 = vadd.xlane.f32.xlu0 %v1796_v24 }
 0x7c7   : > { %v1799_v26 = vsel %vm613_vm1, %v1795_v25, 0.0 }
 0x7ca   : > { %1800 = vadd.xlane.f32.xlu0 %v1799_v26 }
 0x853   : > { %v1798_v29 = vpop.xlane.xlu0 %1797 }
 0x854   : > { %v1802_v30 = vmul.f32 0.03125, %v1798_v29 }
 0x856   : > { %v1804_v31 = vadd.f32 1e-05, %v1802_v30 }
 0x857   : > { %v1801_v32 = vpop.xlane.xlu0 %1800 }
 0x858   : > { %2554 = vrsqrt.f32 %v1804_v31  ;;  %v1803_v33 = vmul.f32 0.03125, %v1801_v32 }
 0x85a   : > { %v1805_v34 = vadd.f32 1e-05, %v1803_v33 }
 0x85c   : > { %2556 = vrsqrt.f32 %v1805_v34 }
 0x862   : > { %v2555_v35 = vpop.eup %2554 }
 0x863   : > { %v1808_v36 = vmul.f32 %v2555_v35, %v1792_v2 }
 0x865   : > { %v1816_v39 = vmul.f32 %v2234_v37, %v1808_v36 }
 0x866   : > { %v2557_v38 = vpop.eup %2556 }
 0x867   : > { %v1809_v40 = vmul.f32 %v2557_v38, %v1793_v23  ;;  %v1824_v44 = vadd.f32 %v2235_v42, %v1816_v39 }
 0x869   : > { %v1817_v43 = vmul.f32 %v2234_v37, %v1809_v40 }
 0x86b   : > { %v1825_v46 = vadd.f32 %v2235_v42, %v1817_v43 }
 0x86d   : > { %v1826_v47 = vpack.c.bf16 %v1825_v46, %v1824_v44 }
 0x86f   : > { %2425 = vmatmul.mubr.msk.bf16.vlgmr.msra.gmra.mrb[40].mxu1 %vm613_vm1, %v1826_v47 }
 0x942   : > { %v1887_v59 = vpop.f32.mrb[40].mxu1 }
 0x943   : > { %v1888_v60 = vadd.f32 %v2236_v57, %v1887_v59  ;;  %v2426_v54 = vpop.f32.mrb[41].mxu1 }
 0x944   : > { %v1890_v61 = vpop.f32.mrb[42].mxu1 }
 0x945   : > { %v1896_v58 = vmul.f32 0.044715, %v1888_v60  ;;  %v1891_v62 = vadd.f32 %v2236_v57, %v1890_v61  ;;  %v2427_v63 = vpop.f32.mrb[43].mxu1  ;;  %v1894_v12 = vmul.f32 0.5, %v1888_v60 }
 0x947   : > { %v1898_v0 = vmul.f32 %v1896_v58, %v1888_v60  ;;  %v1897_v1 = vmul.f32 0.044715, %v1891_v62  ;;  %v1895_v45 = vmul.f32 0.5, %v1891_v62 }
 0x949   : > { %v1900_v41 = vmul.f32 %v1898_v0, %v1888_v60  ;;  %v1899_v4 = vmul.f32 %v1897_v1, %v1891_v62 }
 0x94b   : > { %v1902_v5 = vadd.f32 %v1900_v41, %v1888_v60  ;;  %v1901_v6 = vmul.f32 %v1899_v4, %v1891_v62 }
 0x94d   : > { %v1904_v17 = vmul.f32 0.7978846, %v1902_v5  ;;  %v1903_v7 = vadd.f32 %v1901_v6, %v1891_v62 }
 0x94f   : > { %2558 = vtanh.f32 %v1904_v17  ;;  %v1905_v8 = vmul.f32 0.7978846, %v1903_v7 }
 0x951   : > { %2560 = vtanh.f32 %v1905_v8 }
 0x959   : > { %v2559_v9 = vpop.eup %2558 }
 0x95a   : > { %v1908_v10 = vadd.f32 1.0, %v2559_v9 }
 0x95b   : > { %v2561_v11 = vpop.eup %2560 }
 0x95c   : > { %v1909_v14 = vadd.f32 1.0, %v2561_v11  ;;  %v1910_v16 = vmul.f32 %v1908_v10, %v1894_v12 }
 0x95e   : > { %v1911_v18 = vmul.f32 %v1909_v14, %v1895_v45 }
 0x960   : > { %v1912_v19 = vpack.c.bf16 %v1911_v18, %v1910_v16 }
 0x962   : > { %2445 = vmatmul.mubr.bf16.vlgmr.msra.gmra.mrb[32].mxu0 %v1912_v19 }
 0xa35   : > { %v2011_v20 = vpop.f32.mrb[32].mxu0 }
 0xa36   : > { %v2018_v2 = vadd.f32 %v2011_v20, %v2965_v13  ;;  %v2446_v22 = vpop.f32.mrb[33].mxu0  ;;  %2034 = sbr.rel (%p2249_p5) target bundleno = 2629 (0xa45), region = 80 }
 0xa37   : > { %v2014_v23 = vpop.f32.mrb[34].mxu0 }
 0xa38   : > { %v2027_v3 = vadd.f32 %v2248_v21, %v2018_v2  ;;  %v2019_v24 = vadd.f32 %v2014_v23, %v2968_v15  ;;  %v2447_v25 = vpop.f32.mrb[35].mxu0 }
 0xa3a   : > { %2029 = vst.msk [vmem:[#allocation2] sm:$0xff] %vm613_vm1, %v2027_v3  ;;  %v2028_v26 = vadd.f32 %v2248_v21, %v2019_v24 }
 0xa3c   : > { %2030 = vst.msk [vmem:[#allocation2 + $0x8] sm:$0xff] %vm613_vm1, %v2028_v26 }
 0xa41   : > { %v2035_v27 = vld [vmem:[#allocation2] sm:$0xff] }
 0xa42   : > { %2037 = vst.msk [vmem:[#allocation4] sm:$0xff] %vm613_vm1, %v2035_v27 }
 0xa43   : > { %v2036_v28 = vld [vmem:[#allocation2 + $0x8] sm:$0xff] }
 0xa44   : > { %2038 = vst.msk [vmem:[#allocation4 + $0x8] sm:$0xff] %vm613_vm1, %v2036_v28 }
 0xa45 PF: > { %p2452_p6 = scmp.eq.s32.totalorder %s2691_s26, 1  ;;  %s2613_s27 = smov [#allocation4]  }
 0xa46   : > { %s2045_s18 = sshll.u32 %s2613_s27, 4  ;;  %s2046_s18 = int_to_ptr.vmem [resolvable:$true] %s2045_s18 }
 0xa47   : > { %s2562_s28 = scalar_lea.vmem %s2046_s18, 256  ;;  %p2569_p10 = scmp.lt.s32.totalorder %s2046_s18, %s2046_s18 }
 0xa48   : > { %p2563_p7 = scmp.ne.s32.totalorder %s2046_s18, %s2562_s28  ;;  %p2570_p11 = scmp.lt.s32.totalorder %s2562_s28, %s2562_s28 }
 0xa4a   : > { %p2564_p8 = pnand %p2563_p7, %p2452_p6  ;;  %p2571_p12 = por %p2570_p11, %p2569_p10 }
 0xa4c   : > { %p2565_p9 = pneg %p2564_p8 }
 0xa4e   : > { %p2572_p13 = pnand %p2571_p12, %p2565_p9 }
 0xa50   : > { %2575 = shalt.err (!%p2572_p13)
}
 0xa51   : > { %s3080_s15 = sld [smem:[#allocation11_spill]] }
 0xa57   : > { %s2576_s19 = scalar_lea.hbm %s3080_s15, 256 }
 0xa58   : > { %p2577_p0 = scmp.ne.s32.totalorder %s3080_s15, %s2576_s19  ;;  %p2582_p3 = scmp.lt.u32.totalorder %s2576_s19, %s3080_s15 }
 0xa5a   : > { %p2578_p1 = pnand %p2577_p0, %p2452_p6 }
 0xa5c   : > { %p2579_p2 = pneg %p2578_p1 }
 0xa5e   : > { %p2584_p4 = pnand %p2582_p3, %p2579_p2 }
 0xa60   : > { %2587 = shalt.err (!%p2584_p4)
}
 0xa61   : > { %s2614_s29 = smov 128  }
 0xa62   : > { %2449 = dma.vmem_to_hbm [thread:$0]  (%p2452_p6), %s2046_s18, 256, %s3080_s15, [#allocation5], %s2614_s29, %s2614_s29, %s2610_s30  }
 0xa63   : > { %2593 = dma.done.wait (%p2452_p6), [#allocation5], 256  }
 0xa64   : > { %2595 = vsyncadd (%p2452_p6), [#allocation5], 4294967040 }
 0xa65 PF: > { %s3081_s13 = sld [smem:[#allocation7_spill]] }
 0xa6b   : > { %s24_s25 = sadd.s32 1, %s3081_s13  }
 0xa6c   : > { %p21_p5 = scmp.ge.s32.totalorder %s24_s25, 4  }
 0xa6e   :  { %23 = sbr.rel (!%p21_p5) target bundleno = 5 (0x5), region = 140 }
 0xa75   :  { %2061 = vsyncpa [#allocation5], 1 }
 0xa76   :  { %2063 = vsyncpa [#allocation5 + $0x1], 1 }

</bundles_post_ra>
